<compile_context>
chip_gen: v5e
topology: v5e:2x2
jax: 0.10.0
libtpu: 0.0.40
codegen_flags: <defaults>
</compile_context>

<pallas_src>
import math

import jax
import jax.numpy as jnp
from jax.experimental import pallas as pl
from jax.experimental.pallas import tpu as pltpu


def _time2vec_kernel(t_ref, s_ref, aux_ref, o_ref):
    # t_ref:   (tm, k)     raw time steps (f32), k original rows packed per row
    # s_ref:   (k, k*E)    block-diagonal pre-scaled weights (resident)
    # aux_ref: (2, k*E)    row 0 = bias (tiled k times), row 1 = linear mask
    # o_ref:   (tm, k*E)
    z = jnp.dot(t_ref[...], s_ref[...],
                preferred_element_type=jnp.float32) + aux_ref[0:1, :]
    m_full = jnp.broadcast_to(aux_ref[1:2, :], z.shape)
    out = jnp.where(m_full > 0.5, z, jnp.sin(z))   # linear lanes pass through
    o_ref[...] = out.astype(o_ref.dtype)


def time2vec(time_steps, w_lin, b_lin, w, b, max_steps, *, tm=1024,
             out_dtype=jnp.float32):
    """time_steps: (B, S) int/float -> (B, S, 2*half) in `out_dtype`."""
    B, S = time_steps.shape
    half = w.shape[0]
    E = 2 * half
    N = B * S

    scale = (1.0 / float(max_steps)) if float(max_steps) > 0 else 1.0

    # ---- host-side parameter prep (tiny; done once per call) ---------------
    w_all = jnp.concatenate([w_lin.astype(jnp.float32) * scale,
                             w.astype(jnp.float32) * scale])          # (E,)
    b_all = jnp.concatenate([b_lin.astype(jnp.float32),
                             b.astype(jnp.float32)])                  # (E,)

    # Lane packing factor: pack k original rows per kernel row so the output
    # tile is k*E lanes (>= 1024, multiple of 128) -> dense unmasked stores.
    k = math.lcm(E, 128) // E
    k *= max(1, math.ceil(1024 / (k * E)))
    lane = k * E

    # Block-diagonal selection/scale matrix driven through the MXU:
    # row j carries the pre-scaled per-channel weights in columns j*E:(j+1)*E.
    sel = jnp.kron(jnp.eye(k, dtype=jnp.float32), w_all[None, :])     # (k, lane)
    aux = jnp.stack([
        jnp.tile(b_all, k),                                           # bias
        jnp.tile((jnp.arange(E) < half).astype(jnp.float32), k),      # lin mask
    ])                                                                # (2, lane)

    # ---- pad the packed row count up to a whole number of tiles ------------
    tm = max(8, (int(tm) // 8) * 8)                     # sublane-aligned tile
    rows_needed = max(1, -(-N // k))                    # ceil(N / k)
    tm_eff = min(tm, ((rows_needed + 7) // 8) * 8)      # don't over-tile tiny N
    rows = -(-rows_needed // tm_eff) * tm_eff           # multiple of tm_eff
    n_pad = rows * k - N

    t_flat = time_steps.reshape(-1).astype(jnp.float32)
    if n_pad:
        t_flat = jnp.pad(t_flat, (0, n_pad))
    t_packed = t_flat.reshape(rows, k)

    # Scoped-VMEM budget: double-buffered output tile + intermediates; v5e's
    # default (16 MiB) is too tight at tm=1024, so request explicitly.  Kept
    # <= 56 MiB so a raised tm still fits v7x's 64 MiB physical VMEM.
    out_tile_bytes = tm_eff * lane * jnp.dtype(out_dtype).itemsize
    vmem_limit = int(min(max(32 << 20, 6 * out_tile_bytes), 56 << 20))

    out_packed = pl.pallas_call(
        _time2vec_kernel,
        out_shape=jax.ShapeDtypeStruct((rows, lane), out_dtype),
        grid_spec=pl.GridSpec(
            grid=(rows // tm_eff,),
            in_specs=[
                pl.BlockSpec((tm_eff, k), lambda i: (i, 0)),
                pl.BlockSpec((k, lane), lambda i: (0, 0)),
                pl.BlockSpec((2, lane), lambda i: (0, 0)),
            ],
            out_specs=pl.BlockSpec((tm_eff, lane), lambda i: (i, 0)),
        ),
        compiler_params=pltpu.CompilerParams(
            dimension_semantics=("parallel",),
            vmem_limit_bytes=vmem_limit),
    )(t_packed, sel, aux)

    # (rows, k*E) is byte-identical to (rows*k, E); drop the pad rows.
    out = out_packed.reshape(rows * k, E)[:N].reshape(B, S, E)
    return out


def time2vec_reference(time_steps, w_lin, b_lin, w, b, max_steps):
    t = time_steps.astype(jnp.float32)[..., None]
    if float(max_steps) > 0:
        t = t / max_steps
    linear_part = t * w_lin[None, None, :] + b_lin[None, None, :]
    periodic_part = jnp.sin(t * w[None, None, :] + b[None, None, :])
    return jnp.concatenate([linear_part, periodic_part], axis=-1)


if __name__ == "__main__":
    # Module config: embed_dim=32, max_steps=100. Input: (batch=2, seq=8) steps.
    embed_dim = 32
    half = embed_dim // 2
    max_steps = 100.0
    B, S = 2, 8

    key = jax.random.PRNGKey(0)
    k1, k2, k3, k4, k5 = jax.random.split(key, 5)

    # Deterministic synthetic parameters (shapes match the PyTorch module).
    w_lin = jax.random.normal(k1, (half,), jnp.float32) * 0.5   # Linear(1,E/2).weight[:,0]
    b_lin = jax.random.normal(k2, (half,), jnp.float32) * 0.1   # Linear(1,E/2).bias
    w = jax.random.normal(k3, (half,), jnp.float32)             # self.w
    b = jax.random.normal(k4, (half,), jnp.float32)             # self.b

    time_steps = jax.random.randint(k5, (B, S), 0, 100).astype(jnp.float32)

    # 1) Default f32 path (matches the PyTorch module).
    out = jax.block_until_ready(
        time2vec(time_steps, w_lin, b_lin, w, b, max_steps))
    ref = time2vec_reference(time_steps, w_lin, b_lin, w, b, max_steps)
    assert out.shape == (B, S, embed_dim)
    assert jnp.allclose(out, ref, atol=1e-5, rtol=1e-5)

    # 2) bf16 output path (recommended on v5e) — smoke test at bf16 tolerance.
    out_bf16 = jax.block_until_ready(
        time2vec(time_steps, w_lin, b_lin, w, b, max_steps,
                 out_dtype=jnp.bfloat16))
    assert out_bf16.dtype == jnp.bfloat16
    assert jnp.allclose(out_bf16.astype(jnp.float32), ref, atol=2e-2, rtol=2e-2)

    # 3) Multi-tile grid + row-padding path (two grid steps at the default tm).
    B2, S2 = 2, 20000
    ts2 = jax.random.randint(jax.random.PRNGKey(1), (B2, S2), 0, 100)
    ts2 = ts2.astype(jnp.float32)
    out2 = jax.block_until_ready(
        time2vec(ts2, w_lin, b_lin, w, b, max_steps))
    ref2 = time2vec_reference(ts2, w_lin, b_lin, w, b, max_steps)
    assert out2.shape == (B2, S2, embed_dim)
    assert jnp.allclose(out2, ref2, atol=1e-5, rtol=1e-5)

    print("KERNEL_OK")
</pallas_src>

<mosaic_0001>
module attributes {stable_mosaic.version = 11 : i64} {
  func.func @_time2vec_kernel(%arg0: i32, %arg1: memref<8x32xf32, #tpu.memory_space<vmem>>, %arg2: memref<32x1024xf32, #tpu.memory_space<vmem>>, %arg3: memref<2x1024xf32, #tpu.memory_space<vmem>>, %arg4: memref<8x1024xf32, #tpu.memory_space<vmem>>) attributes {dimension_semantics = [#tpu.dimension_semantics<parallel>], iteration_bounds = array<i64: 1>, scalar_prefetch = 0 : i64, scratch_operands = 0 : i64, tpu.core_type = #tpu.core_type<tc>, window_params = [{transform_indices = @transform_0, window_bounds = array<i64: 8, 32>}, {pipeline_mode = #tpu.pipeline_mode<synchronous>, transform_indices = @transform_1, window_bounds = array<i64: 32, 1024>}, {pipeline_mode = #tpu.pipeline_mode<synchronous>, transform_indices = @transform_2, window_bounds = array<i64: 2, 1024>}, {transform_indices = @transform_3, window_bounds = array<i64: 8, 1024>}]} {
    %c0 = arith.constant 0 : index
    %c0_0 = arith.constant 0 : index
    %0 = vector.load %arg1[%c0, %c0_0] : memref<8x32xf32, #tpu.memory_space<vmem>>, vector<8x32xf32>
    %c0_1 = arith.constant 0 : index
    %c0_2 = arith.constant 0 : index
    %1 = vector.load %arg2[%c0_1, %c0_2] : memref<32x1024xf32, #tpu.memory_space<vmem>>, vector<32x1024xf32>
    %cst = arith.constant dense<0.000000e+00> : vector<8x1024xf32>
    %2 = tpu.matmul %0, %1, %cst {dimension_numbers = #tpu.dot_dimension_numbers<[1], [0], [0], [1], [0, 0, 1, 1], [], []>} : vector<8x32xf32>, vector<32x1024xf32>, vector<8x1024xf32> -> vector<8x1024xf32>
    %c0_3 = arith.constant 0 : index
    %c0_4 = arith.constant 0 : index
    %3 = vector.load %arg3[%c0_3, %c0_4] : memref<2x1024xf32, #tpu.memory_space<vmem>>, vector<1x1024xf32>
    %4 = vector.broadcast %3 : vector<1x1024xf32> to vector<8x1024xf32>
    %5 = arith.addf %2, %4 : vector<8x1024xf32>
    %c1 = arith.constant 1 : index
    %c0_5 = arith.constant 0 : index
    %6 = vector.load %arg3[%c1, %c0_5] : memref<2x1024xf32, #tpu.memory_space<vmem>>, vector<1x1024xf32>
    %7 = vector.shape_cast %6 : vector<1x1024xf32> to vector<1x1024xf32>
    %8 = vector.broadcast %7 : vector<1x1024xf32> to vector<8x1024xf32>
    %cst_6 = arith.constant 5.000000e-01 : f32
    %9 = vector.broadcast %cst_6 : f32 to vector<8x1024xf32>
    %10 = arith.cmpf ogt, %8, %9 : vector<8x1024xf32>
    %11 = math.sin %5 : vector<8x1024xf32>
    %12 = arith.select %10, %5, %11 : vector<8x1024xi1>, vector<8x1024xf32>
    %c0_7 = arith.constant 0 : index
    %c0_8 = arith.constant 0 : index
    %13 = vector.load %arg4[%c0_7, %c0_8] : memref<8x1024xf32, #tpu.memory_space<vmem>>, vector<8x1024xf32>
    tpu.vector_store %arg4[%c0_7, %c0_8], %12 {strides = array<i32>} : memref<8x1024xf32, #tpu.memory_space<vmem>>, vector<8x1024xf32>,
    return
  }
  func.func @transform_0(%arg0: i32) -> (i32, i32) {
    %c0_i32 = arith.constant 0 : i32
    %c0_i32_0 = arith.constant 0 : i32
    return %arg0, %c0_i32 : i32, i32
  }
  func.func @transform_1(%arg0: i32) -> (i32, i32) {
    %c0_i32 = arith.constant 0 : i32
    %c0_i32_0 = arith.constant 0 : i32
    %c0_i32_1 = arith.constant 0 : i32
    return %c0_i32, %c0_i32_0 : i32, i32
  }
  func.func @transform_2(%arg0: i32) -> (i32, i32) {
    %c0_i32 = arith.constant 0 : i32
    %c0_i32_0 = arith.constant 0 : i32
    %c0_i32_1 = arith.constant 0 : i32
    return %c0_i32, %c0_i32_0 : i32, i32
  }
  func.func @transform_3(%arg0: i32) -> (i32, i32) {
    %c0_i32 = arith.constant 0 : i32
    %c0_i32_0 = arith.constant 0 : i32
    return %arg0, %c0_i32 : i32, i32
  }
}

</mosaic_0001>

<bundles_post_ra>
// kernel: tpu_custom_call.1
= control target key start
LH: loop header
LB: loop body
LE: loop exit
PB: predicated region body
PF: predicated region fallthrough
CT: control target
= control target key end

     0   :  { %8 = vsyncpa [#allocation3], 0  ;;  %s2700_s0 = inlined_call_operand.hbm [shape: f32[8,32], index: 0, kind: input, shape index: {}]   ;;  %s2701_s1 = inlined_call_operand.hbm [shape: f32[32,1024], index: 1, kind: input, shape index: {}]   ;;  %s2702_s2 = inlined_call_operand.hbm [shape: f32[2,1024], index: 2, kind: input, shape index: {}]   ;;  %s2703_s3 = inlined_call_operand.hbm [shape: f32[8,1024], index: 3, kind: output, shape index: {}]  }
   0x1   :  { %9 = vsyncpa [#allocation6], 0  ;;  %s26_s14 = sshll.u32 %s2701_s1, 4  ;;  %s27_s14 = int_to_ptr.hbm [resolvable:$true] %s26_s14 }
   0x2   :  { %10 = vsyncpa [#allocation4], 0  ;;  %s1723_s15 = smov [#allocation5]   ;;  %s16_s19 = sshll.u32 %s2700_s0, 4  ;;  %s17_s19 = int_to_ptr.hbm [resolvable:$true] %s16_s19 }
   0x3   :  { %s28_s16 = sshll.u32 %s1723_s15, 4  ;;  %s1724_s20 = smov 1024   ;;  %s29_s16 = int_to_ptr.vmem [resolvable:$true] %s28_s16 }
   0x4   :  { %s1725_s21 = smov 64   ;;  %s1726_s22 = smov [#allocation2]  }
   0x5   :  { %34 = dma.hbm_to_vmem [thread:$0]  %s27_s14, 4096, %s29_s16, [#allocation6], %s1724_s20, %s1724_s20, %s1725_s21  }
   0x6   :  { %s18_s23 = sshll.u32 %s1726_s22, 4  ;;  %s40_s26 = sshll.u32 %s2702_s2, 4  ;;  %s19_s23 = int_to_ptr.vmem [resolvable:$true] %s18_s23  ;;  %s41_s26 = int_to_ptr.hbm [resolvable:$true] %s40_s26 }
   0x7   :  { %21 = dma.hbm_to_vmem [thread:$0]  %s17_s19, 128, %s19_s23, [#allocation3]  }
   0x8   :  { %s1727_s1 = smov [#allocation7]  }
   0x9   :  { %s42_s27 = sshll.u32 %s1727_s1, 4  ;;  %s43_s27 = int_to_ptr.vmem [resolvable:$true] %s42_s27 }
   0xa   :  { %45 = dma.hbm_to_vmem [thread:$0]  %s41_s26, 256, %s43_s27, [#allocation6]  }
   0xb   :  { %1717 = dma.done.wait [#allocation3], 128  }
   0xc   :  { %1718 = vsyncadd [#allocation3], 4294967168 }
   0xd   :  { %1719 = dma.done.wait [#allocation6], 4352  }
   0xe   :  { %1720 = vsyncadd [#allocation6], 4294962944  ;;  %v83_v0 = vld [vmem:[#allocation5 + $0xc0] sm:$0xff]  ;;  %v84_v1 = vld [vmem:[#allocation5 + $0xc8] sm:$0xff]  ;;  %vm109_vm0 = vcmask 261120   ;;  %s1735_s0 = smov [#allocation8]  }
   0xf   :  { %v85_v2 = vld [vmem:[#allocation5 + $0xd0] sm:$0xff]  ;;  %125 = vmatpush.msra.mxu0 %v83_v0  ;;  %145 = vmatpush.msra.mxu1 %v84_v1  ;;  %v86_v3 = vld [vmem:[#allocation5 + $0xd8] sm:$0xff]  ;;  %v75_v4 = vld [vmem:[#allocation5 + $0x80] sm:$0xff]  ;;  %v1728_v0 = vmov 683565275   ;;  %s1561_s2 = sshll.u32 %s1735_s0, 4  ;;  %s1562_s2 = int_to_ptr.vmem [resolvable:$true] %s1561_s2 }
  0x10   :  { %v76_v5 = vld [vmem:[#allocation5 + $0x88] sm:$0xff]  ;;  %165 = vmatpush.msra.mxu2 %v85_v2  ;;  %185 = vmatpush.msra.mxu3 %v86_v3  ;;  %v77_v6 = vld [vmem:[#allocation5 + $0x90] sm:$0xff]  ;;  %v78_v7 = vld [vmem:[#allocation5 + $0x98] sm:$0xff]  ;;  %v1729_v2 = vmov 2475754826   ;;  %s1563_s30 = sshll.u32 %s2703_s3, 4  ;;  %s1564_s30 = int_to_ptr.hbm [resolvable:$true] %s1563_s30 }
  0x11   :  { %v67_v8 = vld [vmem:[#allocation5 + $0x40] sm:$0xff]  ;;  %126 = vmatpush.msra.mxu0 %v75_v4  ;;  %146 = vmatpush.msra.mxu1 %v76_v5  ;;  %v68_v9 = vld [vmem:[#allocation5 + $0x48] sm:$0xff]  ;;  %v69_v10 = vld [vmem:[#allocation5 + $0x50] sm:$0xff]  ;;  %v1730_v4 = vmov 2131351028  }
  0x12   :  { %v70_v11 = vld [vmem:[#allocation5 + $0x58] sm:$0xff]  ;;  %166 = vmatpush.msra.mxu2 %v77_v6  ;;  %186 = vmatpush.msra.mxu3 %v78_v7  ;;  %v59_v12 = vld [vmem:[#allocation5] sm:$0xff]  ;;  %v60_v13 = vld [vmem:[#allocation5 + $0x8] sm:$0xff]  ;;  %v1731_v6 = vmov 2102212464  }
  0x13   :  { %127 = vmatpush.msra.mxu0 %v67_v8  ;;  %147 = vmatpush.msra.mxu1 %v68_v9  ;;  %v61_v14 = vld [vmem:[#allocation5 + $0x10] sm:$0xff]  ;;  %v62_v15 = vld [vmem:[#allocation5 + $0x18] sm:$0xff]  ;;  %v87_v19 = vld [vmem:[#allocation5 + $0xe0] sm:$0xff]  ;;  %v1732_v8 = vmov 920167782  }
  0x14   :  { %167 = vmatpush.msra.mxu2 %v69_v10  ;;  %187 = vmatpush.msra.mxu3 %v70_v11  ;;  %v58_v16 = vld [vmem:[#allocation2] sm:$0xff]  ;;  %v89_v17 = vld [vmem:[#allocation5 + $0xf0] sm:$0xff]  ;;  %v88_v20 = vld [vmem:[#allocation5 + $0xe8] sm:$0xff] }
  0x15   :  { %128 = vmatpush.msra.mxu0 %v59_v12  ;;  %148 = vmatpush.msra.mxu1 %v60_v13  ;;  %v90_v18 = vld [vmem:[#allocation5 + $0xf8] sm:$0xff]  ;;  %v81_v21 = vld [vmem:[#allocation5 + $0xb0] sm:$0xff]  ;;  %v79_v23 = vld [vmem:[#allocation5 + $0xa0] sm:$0xff] }
  0x16   :  { %168 = vmatpush.msra.mxu2 %v61_v14  ;;  %188 = vmatpush.msra.mxu3 %v62_v15  ;;  %v82_v22 = vld [vmem:[#allocation5 + $0xb8] sm:$0xff]  ;;  %v80_v24 = vld [vmem:[#allocation5 + $0xa8] sm:$0xff]  ;;  %v73_v25 = vld [vmem:[#allocation5 + $0x70] sm:$0xff] }
  0x17   :  { %1574 = vmatmul.msk.f32.vlgmr.msra.gmra.mxu0 %vm109_vm0, %v58_v16  ;;  %1575 = vmatmul.msk.f32.vlgmr.msra.gmra.mxu1 %vm109_vm0, %v58_v16  ;;  %v74_v26 = vld [vmem:[#allocation5 + $0x78] sm:$0xff]  ;;  %v71_v27 = vld [vmem:[#allocation5 + $0x60] sm:$0xff]  ;;  %v72_v28 = vld [vmem:[#allocation5 + $0x68] sm:$0xff] }
  0x18   :  { %1576 = vmatmul.msk.f32.vlgmr.msra.gmra.mxu2 %vm109_vm0, %v58_v16  ;;  %1577 = vmatmul.msk.f32.vlgmr.msra.gmra.mxu3 %vm109_vm0, %v58_v16  ;;  %v65_v29 = vld [vmem:[#allocation5 + $0x30] sm:$0xff]  ;;  %v66_v30 = vld [vmem:[#allocation5 + $0x38] sm:$0xff]  ;;  %v63_v31 = vld [vmem:[#allocation5 + $0x20] sm:$0xff] }
  0x19   :  { %245 = vmatpush.msrb.mxu2 %v89_v17  ;;  %265 = vmatpush.msrb.mxu3 %v90_v18  ;;  %v64_v32 = vld [vmem:[#allocation5 + $0x28] sm:$0xff]  ;;  %v1733_v17 = vmov 1326507024  }
  0x1a   :  { %205 = vmatpush.msrb.mxu0 %v87_v19  ;;  %225 = vmatpush.msrb.mxu1 %v88_v20  ;;  %v1773_v33 = vld [vmem:[#allocation7] ss:$2 sm:$0xff] }
  0x1b   :  { %246 = vmatpush.msrb.mxu2 %v81_v21  ;;  %266 = vmatpush.msrb.mxu3 %v82_v22  ;;  %v93_v34 = vperm.slane %v1773_v33, 0  ;;  %v94_v35 = vperm.slane %v1773_v33, 1  ;;  %v95_v53 = vperm.slane %v1773_v33, 2 }
  0x1c   :  { %206 = vmatpush.msrb.mxu0 %v79_v23  ;;  %226 = vmatpush.msrb.mxu1 %v80_v24 }
  0x1d   :  { %247 = vmatpush.msrb.mxu2 %v73_v25  ;;  %267 = vmatpush.msrb.mxu3 %v74_v26 }
  0x1e   :  { %207 = vmatpush.msrb.mxu0 %v71_v27  ;;  %227 = vmatpush.msrb.mxu1 %v72_v28 }
  0x1f   :  { %248 = vmatpush.msrb.mxu2 %v65_v29  ;;  %268 = vmatpush.msrb.mxu3 %v66_v30 }
  0x20   :  { %208 = vmatpush.msrb.mxu0 %v63_v31  ;;  %228 = vmatpush.msrb.mxu1 %v64_v32 }
  0x21   :  { %1578 = vmatmul.msk.f32.vlgmr.msrb.gmra.mxu0 %vm109_vm0, %v58_v16  ;;  %1579 = vmatmul.msk.f32.vlgmr.msrb.gmra.mxu1 %vm109_vm0, %v58_v16 }
  0x22   :  { %1580 = vmatmul.msk.f32.vlgmr.msrb.gmra.mxu2 %vm109_vm0, %v58_v16  ;;  %1581 = vmatmul.msk.f32.vlgmr.msrb.gmra.mxu3 %vm109_vm0, %v58_v16 }
  0x94   :  { %v130_v36 = vpop.f32.mrf.mxu0  ;;  %v150_v37 = vpop.f32.mrf.mxu1 }
  0x95   :  { %v1777_v38 = vadd.f32 %v130_v36, %v93_v34  ;;  %v1779_v39 = vadd.f32 %v150_v37, %v94_v35 }
  0x97   :  { %v300_v40 = vand.u32 2147483647, %v1777_v38  ;;  %v303_v41 = vand.u32 2139095040, %v1777_v38  ;;  %v455_v42 = vand.u32 2147483647, %v1779_v39  ;;  %v458_v43 = vand.u32 2139095040, %v1779_v39 }
  0x99   :  { %v304_v44 = vshrl.u32 %v303_v41, 23  ;;  %v307_v45 = vand.u32 8388607, %v300_v40  ;;  %v459_v46 = vshrl.u32 %v458_v43, 23  ;;  %v462_v50 = vand.u32 8388607, %v455_v42 }
  0x9b   :  { %v1582_v47 = vadd.s32 4294967169, %v304_v44  ;;  %v308_v48 = vor.u32 8388608, %v307_v45  ;;  %v1585_v49 = vadd.s32 4294967169, %v459_v46  ;;  %v170_v54 = vpop.f32.mrf.mxu2  ;;  %v463_v57 = vor.u32 8388608, %v462_v50 }
  0x9c   :  { %v1796_v62 = vadd.f32 %v170_v54, %v95_v53 }
  0x9d   :  { %v310_v51 = vadd.s32 1, %v1582_v47  ;;  %v465_v52 = vadd.s32 1, %v1585_v49  ;;  %v1790_v56 = vshll.u32 %v308_v48, 8  ;;  %v1804_v11 = vshll.u32 %v463_v57, 8 }
  0x9e   :  { %v613_v25 = vand.u32 2139095040, %v1796_v62 }
  0x9f   :  { %vm311_vm1 = vcmp.gt.s32.totalorder %v310_v51, 0  ;;  %vm466_vm2 = vcmp.gt.s32.totalorder %v465_v52, 0  ;;  %v349_v10 = vand.u32 65535, %v1790_v56  ;;  %v350_v15 = vshrl.u32 %v1790_v56, 16 }
  0xa0   :  { %v312_v55 = vsel %vm311_vm1, %v310_v51, 0  ;;  %v467_v59 = vsel %vm466_vm2, %v465_v52, 0  ;;  %v1848_v45 = vand.u32 65535, %v1804_v11 }
  0xa1   :  { %v314_v58 = vand.u32 31, %v312_v55  ;;  %v1792_v60 = vshrl.u32 %v312_v55, 5  ;;  %v1794_v61 = vand.u32 31, %v467_v59  ;;  %v1854_v52 = vshrl.u32 %v467_v59, 5 }
  0xa3   :  { %v315_v63 = vsub.s32 32, %v314_v58  ;;  %v317_v1 = vshll.u32 %v1728_v0, %v314_v58  ;;  %v320_v3 = vshll.u32 %v1729_v2, %v314_v58  ;;  %v323_v5 = vshll.u32 %v1730_v4, %v314_v58 }
  0xa4   :  { %v326_v7 = vshll.u32 %v1731_v6, %v314_v58  ;;  %v329_v9 = vshll.u32 %v1732_v8, %v314_v58  ;;  %vm332_vm3 = vcmp.lt.s32.totalorder %v1792_v60, 1  ;;  %vm335_vm4 = vcmp.lt.s32.totalorder %v1792_v60, 4 }
  0xa5   :  { %v318_v12 = vshrl.u32 %v1729_v2, %v315_v63  ;;  %v321_v13 = vshrl.u32 %v1730_v4, %v315_v63  ;;  %v324_v14 = vshrl.u32 %v1731_v6, %v315_v63  ;;  %v327_v16 = vshrl.u32 %v1732_v8, %v315_v63 }
  0xa6   :  { %v330_v18 = vshrl.u32 %v1733_v17, %v315_v63  ;;  %v1815_v22 = vsub.s32 32, %v1794_v61  ;;  %vm334_vm5 = vcmp.lt.s32.totalorder %v1792_v60, 3  ;;  %v316_v26 = vshrl.u32 %v1728_v0, %v315_v63 }
  0xa7   :  { %v319_v19 = vor.u32 %v318_v12, %v317_v1  ;;  %v322_v20 = vor.u32 %v321_v13, %v320_v3  ;;  %v325_v21 = vor.u32 %v324_v14, %v323_v5  ;;  %v328_v23 = vor.u32 %v327_v16, %v326_v7 }
  0xa8   :  { %v331_v24 = vor.u32 %v330_v18, %v329_v9  ;;  %vm333_vm6 = vcmp.lt.s32.totalorder %v1792_v60, 2  ;;  %v472_v31 = vshll.u32 %v1728_v0, %v1794_v61  ;;  %v475_v32 = vshll.u32 %v1729_v2, %v1794_v61 }
  0xa9   :  { %v340_v27 = vsel %vm332_vm3, %v319_v19, %v322_v20  ;;  %v344_v28 = vsel %vm332_vm3, %v322_v20, %v325_v21  ;;  %v341_v29 = vsel %vm335_vm4, %v328_v23, 920167782  ;;  %v337_v34 = vsel %vm335_vm4, %v325_v21, 2102212464 }
  0xaa   :  { %v345_v30 = vsel %vm335_vm4, %v331_v24, 1326507024  ;;  %v342_v35 = vsel %vm334_vm5, %v325_v21, %v341_v29  ;;  %v473_v37 = vshrl.u32 %v1729_v2, %v1815_v22  ;;  %v476_v44 = vshrl.u32 %v1730_v4, %v1815_v22 }
  0xab   :  { %v346_v36 = vsel %vm334_vm5, %v328_v23, %v345_v30  ;;  %v343_v41 = vsel %vm333_vm6, %v340_v27, %v342_v35  ;;  %v336_v50 = vsel %vm332_vm3, %v316_v26, %v319_v19  ;;  %v338_v51 = vsel %vm334_vm5, %v322_v20, %v337_v34 }
  0xac   :  { %v347_v43 = vsel %vm333_vm6, %v344_v28, %v346_v36  ;;  %v373_v48 = vand.u32 65535, %v343_v41  ;;  %v374_v49 = vshrl.u32 %v343_v41, 16  ;;  %v1856_v53 = vor.u32 %v473_v37, %v472_v31 }
  0xad   :  { %v351_v46 = vand.u32 65535, %v347_v43  ;;  %v352_v47 = vshrl.u32 %v347_v43, 16  ;;  %v1858_v57 = vor.u32 %v476_v44, %v475_v32  ;;  %v478_v58 = vshll.u32 %v1730_v4, %v1794_v61 }
  0xae   :  { %v376_v1 = vmul.u32 %v374_v49, %v349_v10  ;;  %v377_v3 = vmul.u32 %v373_v48, %v350_v15  ;;  %v479_v5 = vshrl.u32 %v1731_v6, %v1815_v22  ;;  %v375_v12 = vmul.u32 %v373_v48, %v349_v10 }
  0xaf   :  { %v354_v54 = vmul.u32 %v352_v47, %v349_v10  ;;  %v355_v55 = vmul.u32 %v351_v46, %v350_v15  ;;  %v353_v63 = vmul.u32 %v351_v46, %v349_v10  ;;  %v356_v7 = vmul.u32 %v352_v47, %v350_v15 }
  0xb0   :  { %v378_v59 = vmul.u32 %v374_v49, %v350_v15  ;;  %v379_v18 = vshll.u32 %v376_v1, 16  ;;  %v381_v20 = vshll.u32 %v377_v3, 16  ;;  %v481_v21 = vshll.u32 %v1731_v6, %v1794_v61 }
  0xb1   :  { %v357_v9 = vshll.u32 %v354_v54, 16  ;;  %v358_v13 = vshrl.u32 %v354_v54, 16  ;;  %v359_v14 = vshll.u32 %v355_v55, 16  ;;  %v360_v16 = vshrl.u32 %v355_v55, 16 }
  0xb2   :  { %v1734_v23 = vmov 0   ;;  %vm383_vm8 = vc.u32 %v375_v12, %v379_v18  ;;  %v385_v26 = vadd.s32 %v379_v18, %v375_v12  ;;  %v482_v27 = vshrl.u32 %v1732_v8, %v1815_v22 }
  0xb3   :  { %vm361_vm7 = vc.u32 %v353_v63, %v357_v9  ;;  %v363_v19 = vadd.s32 %v357_v9, %v353_v63  ;;  %v384_v15 = vsel %vm383_vm8, 1, %v1734_v23  ;;  %v484_v28 = vshll.u32 %v1732_v8, %v1794_v61 }
  0xb4   :  { %v362_v24 = vsel %vm361_vm7, 1, %v1734_v23  ;;  %v386_v30 = vadd.s32 %v384_v15, %v378_v59  ;;  %vm387_vm10 = vc.u32 %v385_v26, %v381_v20  ;;  %v1873_v31 = vor.u32 %v479_v5, %v478_v58 }
  0xb5   :  { %v364_v10 = vadd.s32 %v362_v24, %v356_v7  ;;  %vm365_vm9 = vc.u32 %v363_v19, %v359_v14  ;;  %v388_v34 = vsel %vm387_vm10, 1, %v1734_v23  ;;  %v483_v35 = vor.u32 %v482_v27, %v481_v21 }
  0xb6   :  { %v366_v29 = vsel %vm365_vm9, 1, %v1734_v23  ;;  %v485_v36 = vshrl.u32 %v1733_v17, %v1815_v22  ;;  %v380_v37 = vshrl.u32 %v376_v1, 16  ;;  %v390_v41 = vadd.s32 %v388_v34, %v386_v30 }
  0xb7   :  { %v368_v32 = vadd.s32 %v366_v29, %v364_v10  ;;  %vm487_vm11 = vcmp.lt.s32.totalorder %v1854_v52, 1  ;;  %vm489_vm12 = vcmp.lt.s32.totalorder %v1854_v52, 3  ;;  %v382_v43 = vshrl.u32 %v377_v3, 16 }
  0xb8   :  { %v486_v44 = vor.u32 %v485_v36, %v484_v28  ;;  %vm490_vm13 = vcmp.lt.s32.totalorder %v1854_v52, 4  ;;  %v1881_v46 = vadd.s32 %v385_v26, %v381_v20  ;;  %v391_v47 = vadd.s32 %v390_v41, %v380_v37 }
  0xb9   :  { %v369_v61 = vadd.s32 %v368_v32, %v358_v13  ;;  %v495_v48 = vsel %vm487_vm11, %v1856_v53, %v1858_v57  ;;  %v496_v49 = vsel %vm490_vm13, %v483_v35, 920167782  ;;  %vm488_vm14 = vcmp.lt.s32.totalorder %v1854_v52, 2 }
  0xba   :  { %v497_v55 = vsel %vm489_vm12, %v1873_v31, %v496_v49  ;;  %v499_v58 = vsel %vm487_vm11, %v1858_v57, %v1873_v31  ;;  %v339_v63 = vsel %vm333_vm6, %v336_v50, %v338_v51  ;;  %v392_v1 = vadd.s32 %v391_v47, %v382_v43 }
  0xbb   :  { %v1889_v54 = vadd.s32 %v369_v61, %v360_v16  ;;  %v498_v3 = vsel %vm488_vm14, %v495_v48, %v497_v55  ;;  %v500_v5 = vsel %vm490_vm13, %v486_v44, 1326507024  ;;  %v505_v9 = vshrl.u32 %v1804_v11, 16 }
  0xbc   :  { %v501_v7 = vsel %vm489_vm12, %v483_v35, %v500_v5  ;;  %v528_v12 = vand.u32 65535, %v498_v3  ;;  %v396_v59 = vadd.s32 1, %v392_v1  ;;  %v529_v50 = vshrl.u32 %v498_v3, 16 }
  0xbd   :  { %vm395_vm15 = vc.u32 %v1889_v54, %v1881_v46  ;;  %v502_v60 = vsel %vm488_vm14, %v499_v58, %v501_v7  ;;  %v614_v51 = vshrl.u32 %v613_v25, 23  ;;  %v393_v13 = vmul.u32 %v1790_v56, %v339_v63 }
  0xbe   :  { %v506_v14 = vand.u32 65535, %v502_v60  ;;  %v507_v16 = vshrl.u32 %v502_v60, 16  ;;  %v397_v18 = vsel %vm395_vm15, %v396_v59, %v392_v1  ;;  %v531_v19 = vmul.u32 %v529_v50, %v1848_v45 }
  0xbf   :  { %v532_v20 = vmul.u32 %v528_v12, %v505_v9  ;;  %v398_v21 = vadd.s32 %v397_v18, %v393_v13  ;;  %v471_v24 = vshrl.u32 %v1728_v0, %v1815_v22  ;;  %v530_v10 = vmul.u32 %v528_v12, %v1848_v45 }
  0xc0   :  { %v509_v26 = vmul.u32 %v507_v16, %v1848_v45  ;;  %v510_v27 = vmul.u32 %v506_v14, %v505_v9  ;;  %v533_v15 = vmul.u32 %v529_v50, %v505_v9  ;;  %v534_v28 = vshll.u32 %v531_v19, 16 }
  0xc1   :  { %v1588_v25 = vadd.s32 4294967169, %v614_v51  ;;  %v399_v29 = vadd.s32 536870912, %v398_v21  ;;  %v508_v56 = vmul.u32 %v506_v14, %v1848_v45  ;;  %v511_v30 = vmul.u32 %v507_v16, %v505_v9 }
  0xc2   :  { %v512_v32 = vshll.u32 %v509_v26, 16  ;;  %v514_v34 = vshll.u32 %v510_v27, 16  ;;  %v536_v35 = vshll.u32 %v532_v20, 16  ;;  %vm538_vm0 = vc.u32 %v530_v10, %v534_v28 }
  0xc3   :  { %v540_v36 = vadd.s32 %v534_v28, %v530_v10  ;;  %v400_v37 = vshrl.u32 %v399_v29, 30  ;;  %v539_v41 = vsel %vm538_vm0, 1, %v1734_v23  ;;  %v610_v44 = vand.u32 2147483647, %v1796_v62 }
  0xc4   :  { %vm516_vm1 = vc.u32 %v508_v56, %v512_v32  ;;  %v518_v22 = vadd.s32 %v512_v32, %v508_v56  ;;  %v541_v43 = vadd.s32 %v539_v41, %v533_v15  ;;  %v492_v45 = vsel %vm490_vm13, %v1873_v31, 2102212464 }
  0xc5   :  { %v517_v61 = vsel %vm516_vm1, 1, %v1734_v23  ;;  %vm542_vm2 = vc.u32 %v540_v36, %v536_v35  ;;  %v401_v47 = vshll.u32 %v400_v37, 30  ;;  %v491_v49 = vsel %vm487_vm11, %v471_v24, %v1856_v53 }
  0xc6   :  { %v519_v48 = vadd.s32 %v517_v61, %v511_v30  ;;  %vm520_vm3 = vc.u32 %v518_v22, %v514_v34  ;;  %v543_v58 = vsel %vm542_vm2, 1, %v1734_v23  ;;  %v620_v63 = vadd.s32 1, %v1588_v25 }
  0xc7   :  { %v521_v55 = vsel %vm520_vm3, 1, %v1734_v23  ;;  %v402_v1 = vsub.s32 %v398_v21, %v401_v47  ;;  %v513_v3 = vshrl.u32 %v509_v26, 16  ;;  %v545_v7 = vadd.s32 %v543_v58, %v541_v43  ;;  %v1974_v47 = vld [vmem:[#allocation7 + $0x1] ss:$2 sm:$0xff] }
  0xc8   :  { %v523_v5 = vadd.s32 %v521_v55, %v519_v48  ;;  %v493_v9 = vsel %vm489_vm12, %v1858_v57, %v492_v45  ;;  %v515_v31 = vshrl.u32 %v510_v27, 16  ;;  %v535_v12 = vshrl.u32 %v531_v19, 16 }
  0xc9   :  { %vm621_vm4 = vcmp.gt.s32.totalorder %v620_v63, 0  ;;  %vm403_vm5 = vcmp.lt.s32.totalorder %v402_v1, 0  ;;  %v404_v59 = vsub.s32 0, %v402_v1  ;;  %v424_v60 = vsub.s32 4, %v400_v37 }
  0xca   :  { %v524_v53 = vadd.s32 %v523_v5, %v513_v3  ;;  %vm302_vm6 = vcmp.lt.s32.totalorder %v1777_v38, 0  ;;  %v537_v50 = vshrl.u32 %v532_v20, 16  ;;  %v546_v51 = vadd.s32 %v545_v7, %v535_v12 }
  0xcb   :  { %v622_v13 = vsel %vm621_vm4, %v620_v63, 0  ;;  %v405_v14 = vsel %vm403_vm5, %v404_v59, %v402_v1  ;;  %v494_v16 = vsel %vm488_vm14, %v491_v49, %v493_v9  ;;  %v617_v57 = vand.u32 8388607, %v610_v44 }
  0xcc   :  { %v1938_v18 = vadd.s32 %v524_v53, %v515_v31  ;;  %v406_v19 = vclz %v405_v14  ;;  %v1942_v21 = vadd.s32 %v540_v36, %v536_v35  ;;  %v547_v24 = vadd.s32 %v546_v51, %v537_v50 }
  0xcd   :  { %v624_v26 = vand.u32 31, %v622_v13  ;;  %v425_v27 = vsel %vm302_vm6, %v424_v60, %v400_v37  ;;  %vm1952_vm8 = vcmp.le.f32.partialorder %v300_v40, 0.7853982  ;;  %v394_v28 = vadd.s32 %v1881_v46, %v1889_v54 }
  0xce   :  { %v1583_v20 = vadd.s32 4294967294, %v406_v19  ;;  %vm550_vm7 = vc.u32 %v1938_v18, %v1942_v21  ;;  %v551_v10 = vadd.s32 1, %v547_v24  ;;  %v548_v25 = vmul.u32 %v1804_v11, %v494_v16 }
  0xcf   :  { %v1948_v52 = vsub.s32 32, %v624_v26  ;;  %v618_v29 = vor.u32 8388608, %v617_v57  ;;  %v427_v56 = vsel %vm1952_vm8, 0, %v425_v27  ;;  %v1961_v32 = vshrl.u32 %v622_v13, 5 }
  0xd0   :  { %vm1584_vm9 = vcmp.lt.s32.totalorder %v1583_v20, 0  ;;  %v552_v30 = vsel %vm550_vm7, %v551_v10, %v547_v24  ;;  %v627_v11 = vshll.u32 %v1728_v0, %v624_v26  ;;  %v630_v54 = vshll.u32 %v1729_v2, %v624_v26 }
  0xd1   :  { %v409_v34 = vsel %vm1584_vm9, 0, %v1583_v20  ;;  %v553_v35 = vadd.s32 %v552_v30, %v548_v25  ;;  %v628_v40 = vshrl.u32 %v1729_v2, %v1948_v52  ;;  %v631_v36 = vshrl.u32 %v1730_v4, %v1948_v52 }
  0xd2   :  { %v410_v37 = vsub.s32 32, %v409_v34  ;;  %v414_v46 = vsub.s32 4294967266, %v409_v34  ;;  %v634_v41 = vshrl.u32 %v1731_v6, %v1948_v52  ;;  %v636_v61 = vshll.u32 %v1731_v6, %v624_v26 }
  0xd3   :  { %v554_v22 = vadd.s32 536870912, %v553_v35  ;;  %v637_v43 = vshrl.u32 %v1732_v8, %v1948_v52  ;;  %v411_v45 = vshll.u32 %v402_v1, %v409_v34  ;;  %v640_v55 = vshrl.u32 %v1733_v17, %v1948_v52 }
  0xd4   :  { %v412_v48 = vshrl.u32 %v394_v28, %v410_v37  ;;  %v415_v49 = vadd.s32 127, %v414_v46  ;;  %v1978_v63 = vor.u32 %v628_v40, %v627_v11  ;;  %v1980_v3 = vor.u32 %v631_v36, %v630_v54 }
  0xd5   :  { %v555_v58 = vshrl.u32 %v554_v22, 30  ;;  %v633_v5 = vshll.u32 %v1730_v4, %v624_v26  ;;  %v638_v31 = vor.u32 %v637_v43, %v636_v61  ;;  %v639_v12 = vshll.u32 %v1732_v8, %v624_v26 }
  0xd6   :  { %v413_v7 = vor.u32 %v412_v48, %v411_v45  ;;  %v416_v9 = vshll.u32 %v415_v49, 23  ;;  %v276_v59 = vperm.slane %v1974_v47, 0  ;;  %v1985_v51 = vshll.u32 %v618_v29, 8 }
  0xd7   :  { %v556_v1 = vshll.u32 %v555_v58, 30  ;;  %v635_v53 = vor.u32 %v634_v41, %v633_v5  ;;  %v641_v50 = vor.u32 %v640_v55, %v639_v12  ;;  %v444_v13 = vadd.s32 3, %v427_v56 }
  0xd8   :  { %v417_v60 = vor.u32 4788187, %v416_v9  ;;  %vm457_vm10 = vcmp.lt.s32.totalorder %v1779_v39, 0  ;;  %vm642_vm11 = vcmp.lt.s32.totalorder %v1961_v32, 1  ;;  %vm645_vm12 = vcmp.lt.s32.totalorder %v1961_v32, 4 }
  0xd9   :  { %v1988_v14 = vsub.s32 %v553_v35, %v556_v1  ;;  %v420_v57 = vcvt.s32.f32 %v413_v7  ;;  %v650_v19 = vsel %vm642_vm11, %v1978_v63, %v1980_v3  ;;  %v651_v24 = vsel %vm645_vm12, %v638_v31, 920167782 }
  0xda   :  { %v418_v16 = vand.u32 2147483647, %v417_v60  ;;  %vm643_vm14 = vcmp.lt.s32.totalorder %v1961_v32, 2  ;;  %vm644_vm15 = vcmp.lt.s32.totalorder %v1961_v32, 3  ;;  %v654_v10 = vsel %vm642_vm11, %v1980_v3, %v635_v53 }
  0xdb   :  { %vm558_vm13 = vcmp.lt.s32.totalorder %v1988_v14, 0  ;;  %v559_v26 = vsub.s32 0, %v1988_v14  ;;  %v652_v20 = vsel %vm644_vm15, %v635_v53, %v651_v24  ;;  %v655_v28 = vsel %vm645_vm12, %v641_v50, 1326507024 }
  0xdc   :  { %v421_v27 = vmul.f32 %v420_v57, %v418_v16  ;;  %v653_v29 = vsel %vm643_vm14, %v650_v19, %v652_v20  ;;  %v656_v56 = vsel %vm644_vm15, %v638_v31, %v655_v28  ;;  %v659_v30 = vand.u32 65535, %v1985_v51 }
  0xdd   :  { %v560_v25 = vsel %vm558_vm13, %v559_v26, %v1988_v14  ;;  %v579_v40 = vsub.s32 4, %v555_v58  ;;  %v657_v36 = vsel %vm643_vm14, %v654_v10, %v656_v56  ;;  %v2017_v37 = vand.u32 3, %v444_v13 }
  0xde   :  { %v422_v34 = vxor.u32 2147483648, %v421_v27  ;;  %v561_v35 = vclz %v560_v25  ;;  %v660_v46 = vshrl.u32 %v1985_v51, 16  ;;  %v661_v11 = vand.u32 65535, %v657_v36 }
  0xdf   :  { %v96_v54 = vperm.slane %v1773_v33, 3  ;;  %v662_v61 = vshrl.u32 %v657_v36, 16  ;;  %v684_v43 = vshrl.u32 %v653_v29, 16  ;;  %v549_v48 = vadd.s32 %v1942_v21, %v1938_v18 }
  0xe0   :  { %v423_v22 = vsel %vm302_vm6, %v422_v34, %v421_v27  ;;  %v1586_v41 = vadd.s32 4294967294, %v561_v35  ;;  %v2032_v49 = vshrl.u32 %v1728_v0, %v1948_v52  ;;  %v2034_v55 = vmul.u32 %v661_v11, %v660_v46 }
  0xe1   :  { %v2026_v45 = vsel %vm1952_vm8, %v1777_v38, %v423_v22  ;;  %v2040_v7 = vsel %vm457_vm10, %v579_v40, %v555_v58  ;;  %v664_v15 = vmul.u32 %v662_v61, %v659_v30  ;;  %v2044_v31 = vsel %vm645_vm12, %v635_v53, 2102212464 }
  0xe2   :  { %v428_v5 = vmul.f32 %v2026_v45, %v2026_v45  ;;  %vm1587_vm0 = vcmp.lt.s32.totalorder %v1586_v41, 0  ;;  %v683_v18 = vand.u32 65535, %v653_v29  ;;  %v2046_v21 = vmul.u32 %v684_v43, %v659_v30 }
  0xe3   :  { %v564_v9 = vsel %vm1587_vm0, 0, %v1586_v41  ;;  %v663_v60 = vmul.u32 %v661_v11, %v659_v30  ;;  %v666_v13 = vmul.u32 %v662_v61, %v660_v46  ;;  %v667_v16 = vshll.u32 %v664_v15, 16 }
  0xe4   :  { %v429_v52 = vmul.f32 -0.001358992, %v428_v5  ;;  %v436_v12 = vmul.f32 -0.00019511016, %v428_v5  ;;  %v565_v1 = vsub.s32 32, %v564_v9  ;;  %v569_v50 = vsub.s32 4294967266, %v564_v9 }
  0xe5   :  { %v669_v57 = vshll.u32 %v2034_v55, 16  ;;  %v566_v24 = vshll.u32 %v1988_v14, %v564_v9  ;;  %vm671_vm1 = vc.u32 %v663_v60, %v667_v16  ;;  %v673_v53 = vadd.s32 %v667_v16, %v663_v60  ;;  %v190_v60 = vpop.f32.mrf.mxu3 }
  0xe6   :  { %v430_v58 = vadd.f32 0.041655596, %v429_v52  ;;  %v437_v19 = vadd.f32 0.008332121, %v436_v12  ;;  %v567_v26 = vshrl.u32 %v549_v48, %v565_v1  ;;  %v570_v27 = vadd.s32 127, %v569_v50 }
  0xe7   :  { %v689_v20 = vshll.u32 %v2046_v21, 16  ;;  %vm2053_vm2 = vcmp.le.f32.partialorder %v455_v42, 0.7853982  ;;  %v672_v56 = vsel %vm671_vm1, 1, %v1734_v23  ;;  %vm675_vm3 = vc.u32 %v673_v53, %v669_v57 }
  0xe8   :  { %v431_v10 = vmul.f32 %v430_v58, %v428_v5  ;;  %v438_v28 = vmul.f32 %v437_v19, %v428_v5  ;;  %v568_v29 = vor.u32 %v567_v26, %v566_v24  ;;  %v571_v34 = vshll.u32 %v570_v27, 23 }
  0xe9   :  { %v674_v35 = vadd.s32 %v672_v56, %v666_v13  ;;  %v687_v14 = vmul.u32 %v683_v18, %v660_v46  ;;  %v676_v11 = vsel %vm675_vm3, 1, %v1734_v23  ;;  %v685_v22 = vmul.u32 %v683_v18, %v659_v30 }
  0xea   :  { %v432_v40 = vadd.f32 -0.4999988, %v431_v10  ;;  %v439_v36 = vadd.f32 -0.16666654, %v438_v28  ;;  %vm447_vm4 = vcmp.eq.s32.totalorder %v2017_v37, 0  ;;  %v668_v61 = vshrl.u32 %v664_v15, 16 }
  0xeb   :  { %v572_v41 = vor.u32 4788187, %v571_v34  ;;  %v678_v42 = vadd.s32 %v676_v11, %v674_v35  ;;  %v688_v48 = vmul.u32 %v684_v43, %v660_v46  ;;  %vm2062_vm5 = vcmp.gt.f32.partialorder %v276_v59, 0.5 }
  0xec   :  { %v433_v52 = vmul.f32 %v432_v40, %v428_v5  ;;  %v440_v12 = vmul.f32 %v439_v36, %v428_v5  ;;  %vm446_vm6 = vcmp.lt.s32.totalorder %v2017_v37, 2  ;;  %v575_v1 = vcvt.s32.f32 %v568_v29 }
  0xed   :  { %vm693_vm7 = vc.u32 %v685_v22, %v689_v20  ;;  %vm443_vm8 = vweird.f32 %v1777_v38  ;;  %v573_v30 = vand.u32 2147483647, %v572_v41  ;;  %v679_v18 = vadd.s32 %v678_v42, %v668_v61 }
  0xee   :  { %v691_v15 = vshll.u32 %v687_v14, 16  ;;  %v694_v46 = vsel %vm693_vm7, 1, %v1734_v23  ;;  %v434_v43 = vadd.f32 1.0, %v433_v52  ;;  %v441_v50 = vadd.f32 1.0, %v440_v12 }
  0xef   :  { %v695_v59 = vadd.s32 %v689_v20, %v685_v22  ;;  %v696_v13 = vadd.s32 %v694_v46, %v688_v48  ;;  %vm450_vm9 = vcmp.eq.s32.totalorder %v2017_v37, 2  ;;  %v576_v16 = vmul.f32 %v575_v1, %v573_v30 }
  0xf0   :  { %v646_v5 = vsel %vm642_vm11, %v2032_v49, %v1978_v63  ;;  %v2076_v57 = vadd.f32 %v190_v60, %v96_v54  ;;  %v442_v58 = vmul.f32 %v441_v50, %v2026_v45  ;;  %v451_v19 = vxor.u32 2147483648, %v434_v43 }
  0xf1   :  { %v670_v24 = vshrl.u32 %v2034_v55, 16  ;;  %vm697_vm12 = vc.u32 %v695_v59, %v691_v15  ;;  %v577_v26 = vxor.u32 2147483648, %v576_v16  ;;  %v582_v27 = vsel %vm2053_vm2, 0, %v2040_v7 }
  0xf2   :  { %v648_v63 = vsel %vm644_vm15, %v1980_v3, %v2044_v31  ;;  %v698_v49 = vsel %vm697_vm12, 1, %v1734_v23  ;;  %v448_v54 = vxor.u32 2147483648, %v442_v58  ;;  %v690_v45 = vshrl.u32 %v2046_v21, 16 }
  0xf3   :  { %v2088_v53 = vadd.s32 %v679_v18, %v670_v24  ;;  %v700_v20 = vadd.s32 %v698_v49, %v696_v13  ;;  %v578_v55 = vsel %vm457_vm10, %v577_v26, %v576_v16  ;;  %v692_v10 = vshrl.u32 %v687_v14, 16  ;;  %v210_v24 = vpop.f32.mrf.mxu0 }
  0xf4   :  { %v2093_v28 = vadd.s32 %v695_v59, %v691_v15  ;;  %v768_v7 = vand.u32 2139095040, %v2076_v57  ;;  %v449_v29 = vsel %vm447_vm4, %v434_v43, %v448_v54  ;;  %v452_v3 = vsel %vm450_vm9, %v451_v19, %v442_v58 }
  0xf5   :  { %v581_v31 = vsel %vm2053_vm2, %v1779_v39, %v578_v55  ;;  %v701_v21 = vadd.s32 %v700_v20, %v690_v45  ;;  %v453_v56 = vsel %vm446_vm6, %v449_v29, %v452_v3  ;;  %v649_v35 = vsel %vm643_vm14, %v646_v5, %v648_v63 }
  0xf6   :  { %v583_v34 = vmul.f32 %v581_v31, %v581_v31  ;;  %v769_v14 = vshrl.u32 %v768_v7, 23  ;;  %v454_v40 = vsel %vm443_vm8, nan, %v453_v56  ;;  %vm705_vm10 = vc.u32 %v2088_v53, %v2093_v28 }
  0xf7   :  { %v702_v36 = vadd.s32 %v701_v21, %v692_v10  ;;  %v765_v11 = vand.u32 2147483647, %v2076_v57  ;;  %v1540_v25 = vsel %vm2062_vm5, %v1777_v38, %v454_v40  ;;  %v599_v32 = vadd.s32 3, %v582_v27 }
  0xf8   :  { %v584_v37 = vmul.f32 -0.001358992, %v583_v34  ;;  %v591_v22 = vmul.f32 -0.00019511016, %v583_v34  ;;  %v1591_v41 = vadd.s32 4294967169, %v769_v14  ;;  %1548 = vst [vmem:[#allocation8] sm:$0xff] %v1540_v25  ;;  %v703_v52 = vmul.u32 %v1985_v51, %v649_v35 }
  0xf9   :  { %v706_v61 = vadd.s32 1, %v702_v36  ;;  %v772_v60 = vand.u32 8388607, %v765_v11  ;;  %v277_v38 = vperm.slane %v1974_v47, 1  ;;  %v600_v9 = vand.u32 3, %v599_v32 }
  0xfa   :  { %v585_v42 = vadd.f32 0.041655596, %v584_v37  ;;  %v592_v48 = vadd.f32 0.008332121, %v591_v22  ;;  %v775_v12 = vadd.s32 1, %v1591_v41  ;;  %v97_v51 = vperm.slane %v1773_v33, 4 }
  0xfb   :  { %v707_v1 = vsel %vm705_vm10, %v706_v61, %v702_v36  ;;  %v773_v13 = vor.u32 8388608, %v772_v60  ;;  %vm2122_vm13 = vcmp.gt.f32.partialorder %v277_v38, 0.5  ;;  %vm598_vm14 = vweird.f32 %v1779_v39 }
  0xfc   :  { %v586_v30 = vmul.f32 %v585_v42, %v583_v34  ;;  %v593_v18 = vmul.f32 %v592_v48, %v583_v34  ;;  %v708_v15 = vadd.s32 %v707_v1, %v703_v52  ;;  %vm776_vm11 = vcmp.gt.s32.totalorder %v775_v12, 0 }
  0xfd   :  { %v777_v46 = vsel %vm776_vm11, %v775_v12, 0  ;;  %vm601_vm15 = vcmp.lt.s32.totalorder %v600_v9, 2  ;;  %vm602_vm0 = vcmp.eq.s32.totalorder %v600_v9, 0  ;;  %vm605_vm1 = vcmp.eq.s32.totalorder %v600_v9, 2 }
  0xfe   :  { %v587_v43 = vadd.f32 -0.4999988, %v586_v30  ;;  %v594_v50 = vadd.f32 -0.16666654, %v593_v18  ;;  %v709_v59 = vadd.s32 536870912, %v708_v15  ;;  %v779_v16 = vand.u32 31, %v777_v46 }
  0xff   :  { %v2134_v20 = vshll.u32 %v773_v13, 8  ;;  %v2136_v55 = vadd.f32 %v210_v24, %v97_v51  ;;  %v2139_v21 = vshrl.u32 %v777_v46, 5  ;;  %vm612_vm3 = vcmp.lt.s32.totalorder %v1796_v62, 0 }
 0x100   :  { %v588_v5 = vmul.f32 %v587_v43, %v583_v34  ;;  %v595_v58 = vmul.f32 %v594_v50, %v583_v34  ;;  %v2120_v19 = vshrl.u32 %v709_v59, 30  ;;  %v2127_v27 = vsub.s32 32, %v779_v16 }
 0x101   :  { %v782_v3 = vshll.u32 %v1728_v0, %v779_v16  ;;  %v785_v56 = vshll.u32 %v1729_v2, %v779_v16  ;;  %v788_v34 = vshll.u32 %v1730_v4, %v779_v16  ;;  %v791_v37 = vshll.u32 %v1731_v6, %v779_v16 }
 0x102   :  { %v589_v63 = vadd.f32 1.0, %v588_v5  ;;  %v596_v49 = vadd.f32 1.0, %v595_v58  ;;  %v711_v33 = vshll.u32 %v2120_v19, 30  ;;  %v783_v54 = vshrl.u32 %v1729_v2, %v2127_v27 }
 0x103   :  { %v786_v45 = vshrl.u32 %v1730_v4, %v2127_v27  ;;  %v789_v35 = vshrl.u32 %v1731_v6, %v2127_v27  ;;  %v792_v22 = vshrl.u32 %v1732_v8, %v2127_v27  ;;  %v794_v61 = vshll.u32 %v1732_v8, %v779_v16 }
 0x104   :  { %v597_v10 = vmul.f32 %v596_v49, %v581_v31  ;;  %v606_v7 = vxor.u32 2147483648, %v589_v63  ;;  %v712_v29 = vsub.s32 %v708_v15, %v711_v33  ;;  %v784_v36 = vor.u32 %v783_v54, %v782_v3 }
 0x105   :  { %v2147_v31 = vor.u32 %v786_v45, %v785_v56  ;;  %v795_v42 = vshrl.u32 %v1733_v17, %v2127_v27  ;;  %v704_v52 = vadd.s32 %v2093_v28, %v2088_v53  ;;  %v793_v1 = vor.u32 %v792_v22, %v791_v37 }
 0x106   :  { %v603_v14 = vxor.u32 2147483648, %v597_v10  ;;  %vm713_vm2 = vcmp.lt.s32.totalorder %v712_v29, 0  ;;  %v714_v40 = vsub.s32 0, %v712_v29  ;;  %v607_v25 = vsel %vm605_vm1, %v606_v7, %v597_v10 }
 0x107   :  { %vm2163_vm4 = vcmp.le.f32.partialorder %v610_v44, 0.7853982  ;;  %v790_v18 = vor.u32 %v789_v35, %v788_v34  ;;  %v796_v15 = vor.u32 %v795_v42, %v794_v61  ;;  %v814_v38 = vand.u32 65535, %v2134_v20 }
 0x108   :  { %v604_v41 = vsel %vm602_vm0, %v589_v63, %v603_v14  ;;  %v715_v32 = vsel %vm713_vm2, %v714_v40, %v712_v29  ;;  %vm797_vm5 = vcmp.lt.s32.totalorder %v2139_v21, 1  ;;  %v923_v28 = vand.u32 2139095040, %v2136_v55 }
 0x109   :  { %v608_v48 = vsel %vm601_vm15, %v604_v41, %v607_v25  ;;  %v716_v12 = vclz %v715_v32  ;;  %v734_v46 = vsub.s32 4, %v2120_v19  ;;  %vm800_vm6 = vcmp.lt.s32.totalorder %v2139_v21, 4 }
 0x10a   :  { %v609_v60 = vsel %vm598_vm14, nan, %v608_v48  ;;  %v805_v44 = vsel %vm797_vm5, %v784_v36, %v2147_v31  ;;  %v815_v43 = vshrl.u32 %v2134_v20, 16  ;;  %vm798_vm8 = vcmp.lt.s32.totalorder %v2139_v21, 2 }
 0x10b   :  { %v1541_v9 = vsel %vm2122_vm13, %v1779_v39, %v609_v60  ;;  %v1589_v53 = vadd.s32 4294967294, %v716_v12  ;;  %vm799_vm9 = vcmp.lt.s32.totalorder %v2139_v21, 3  ;;  %v806_v39 = vsel %vm800_vm6, %v793_v1, 920167782 }
 0x10c   :  { %1549 = vst [vmem:[#allocation8 + $0x8] sm:$0xff] %v1541_v9  ;;  %v807_v59 = vsel %vm799_vm9, %v790_v18, %v806_v39  ;;  %v809_v13 = vsel %vm797_vm5, %v2147_v31, %v790_v18  ;;  %v810_v16 = vsel %vm800_vm6, %v796_v15, 1326507024  ;;  %v924_v24 = vshrl.u32 %v923_v28, 23 }
 0x10d   :  { %vm1590_vm7 = vcmp.lt.s32.totalorder %v1589_v53, 0  ;;  %v808_v58 = vsel %vm798_vm8, %v805_v44, %v807_v59  ;;  %v735_v26 = vsel %vm612_vm3, %v734_v46, %v2120_v19  ;;  %v811_v63 = vsel %vm799_vm9, %v793_v1, %v810_v16 }
 0x10e   :  { %v719_v50 = vsel %vm1590_vm7, 0, %v1589_v53  ;;  %v838_v49 = vand.u32 65535, %v808_v58  ;;  %v839_v33 = vshrl.u32 %v808_v58, 16  ;;  %v812_v7 = vsel %vm798_vm8, %v809_v13, %v811_v63 }
 0x10f   :  { %v720_v51 = vsub.s32 32, %v719_v50  ;;  %v724_v5 = vsub.s32 4294967266, %v719_v50  ;;  %v721_v54 = vshll.u32 %v712_v29, %v719_v50  ;;  %v781_v3 = vshrl.u32 %v1728_v0, %v2127_v27 }
 0x110   :  { %v816_v56 = vand.u32 65535, %v812_v7  ;;  %v817_v34 = vshrl.u32 %v812_v7, 16  ;;  %v841_v35 = vmul.u32 %v839_v33, %v814_v38  ;;  %v737_v19 = vsel %vm2163_vm4, 0, %v735_v26 }
 0x111   :  { %v722_v45 = vshrl.u32 %v704_v52, %v720_v51  ;;  %v725_v10 = vadd.s32 127, %v724_v5  ;;  %v920_v25 = vand.u32 2147483647, %v2136_v55  ;;  %v801_v29 = vsel %vm797_vm5, %v781_v3, %v784_v36 }
 0x112   :  { %v819_v37 = vmul.u32 %v817_v34, %v814_v38  ;;  %v820_v22 = vmul.u32 %v816_v56, %v815_v43  ;;  %v842_v41 = vmul.u32 %v838_v49, %v815_v43  ;;  %v802_v27 = vsel %vm800_vm6, %v790_v18, 2102212464 }
 0x113   :  { %v723_v14 = vor.u32 %v722_v45, %v721_v54  ;;  %v726_v40 = vshll.u32 %v725_v10, 23  ;;  %v844_v61 = vshll.u32 %v841_v35, 16  ;;  %v1594_v42 = vadd.s32 4294967169, %v924_v24 }
 0x114   :  { %v818_v48 = vmul.u32 %v816_v56, %v814_v38  ;;  %v822_v52 = vshll.u32 %v819_v37, 16  ;;  %v840_v12 = vmul.u32 %v838_v49, %v814_v38  ;;  %v843_v1 = vmul.u32 %v839_v33, %v815_v43 }
 0x115   :  { %v727_v32 = vor.u32 4788187, %v726_v40  ;;  %v730_v15 = vcvt.s32.f32 %v723_v14  ;;  %v821_v9 = vmul.u32 %v817_v34, %v815_v43  ;;  %v824_v53 = vshll.u32 %v820_v22, 16 }
 0x116   :  { %vm826_vm12 = vc.u32 %v818_v48, %v822_v52  ;;  %v828_v28 = vadd.s32 %v822_v52, %v818_v48  ;;  %v846_v36 = vshll.u32 %v842_v41, 16  ;;  %vm848_vm10 = vc.u32 %v840_v12, %v844_v61 }
 0x117   :  { %v728_v60 = vand.u32 2147483647, %v727_v32  ;;  %v827_v44 = vsel %vm826_vm12, 1, %v1734_v23  ;;  %v849_v39 = vsel %vm848_vm10, 1, %v1734_v23  ;;  %v850_v18 = vadd.s32 %v844_v61, %v840_v12 }
 0x118   :  { %v803_v50 = vsel %vm799_vm9, %v2147_v31, %v802_v27  ;;  %v829_v38 = vadd.s32 %v827_v44, %v821_v9  ;;  %vm830_vm11 = vc.u32 %v828_v28, %v824_v53  ;;  %v851_v59 = vadd.s32 %v849_v39, %v843_v1 }
 0x119   :  { %v731_v46 = vmul.f32 %v730_v15, %v728_v60  ;;  %v754_v43 = vadd.s32 3, %v737_v19  ;;  %v831_v16 = vsel %vm830_vm11, 1, %v1734_v23  ;;  %vm852_vm13 = vc.u32 %v850_v18, %v846_v36 }
 0x11a   :  { %v823_v51 = vshrl.u32 %v819_v37, 16  ;;  %v833_v5 = vadd.s32 %v831_v16, %v829_v38  ;;  %v853_v58 = vsel %vm852_vm13, 1, %v1734_v23  ;;  %v930_v24 = vadd.s32 1, %v1594_v42 }
 0x11b   :  { %v732_v13 = vxor.u32 2147483648, %v731_v46  ;;  %v804_v63 = vsel %vm798_vm8, %v801_v29, %v803_v50  ;;  %v845_v31 = vshrl.u32 %v841_v35, 16  ;;  %v855_v49 = vadd.s32 %v853_v58, %v851_v59 }
 0x11c   :  { %v825_v54 = vshrl.u32 %v820_v22, 16  ;;  %v834_v45 = vadd.s32 %v833_v5, %v823_v51  ;;  %vm931_vm14 = vcmp.gt.s32.totalorder %v930_v24, 0  ;;  %v847_v7 = vshrl.u32 %v842_v41, 16 }
 0x11d   :  { %v733_v26 = vsel %vm612_vm3, %v732_v13, %v731_v46  ;;  %v856_v3 = vadd.s32 %v855_v49, %v845_v31  ;;  %v932_v56 = vsel %vm931_vm14, %v930_v24, 0  ;;  %v2224_v14 = vadd.s32 %v850_v18, %v846_v36 }
 0x11e   :  { %v736_v33 = vsel %vm2163_vm4, %v1796_v62, %v733_v26  ;;  %v2222_v34 = vadd.s32 %v834_v45, %v825_v54  ;;  %v927_v21 = vand.u32 8388607, %v920_v25  ;;  %v934_v35 = vand.u32 31, %v932_v56 }
 0x11f   :  { %v738_v10 = vmul.f32 %v736_v33, %v736_v33  ;;  %v278_v40 = vperm.slane %v1974_v47, 2  ;;  %v857_v29 = vadd.s32 %v856_v3, %v847_v7  ;;  %v2229_v37 = vand.u32 3, %v754_v43 }
 0x120   :  { %v858_v22 = vmul.u32 %v2134_v20, %v804_v63  ;;  %vm860_vm15 = vc.u32 %v2222_v34, %v2224_v14  ;;  %v2234_v41 = vsub.s32 32, %v934_v35  ;;  %v937_v42 = vshll.u32 %v1728_v0, %v934_v35 }
 0x121   :  { %v739_v19 = vmul.f32 -0.001358992, %v738_v10  ;;  %v746_v30 = vmul.f32 -0.00019511016, %v738_v10  ;;  %v861_v61 = vadd.s32 1, %v857_v29  ;;  %v928_v48 = vor.u32 8388608, %v927_v21 }
 0x122   :  { %v938_v52 = vshrl.u32 %v1729_v2, %v2234_v41  ;;  %v940_v12 = vshll.u32 %v1729_v2, %v934_v35  ;;  %v941_v1 = vshrl.u32 %v1730_v4, %v2234_v41  ;;  %v2242_v9 = vshrl.u32 %v932_v56, 5 }
 0x123   :  { %v740_v32 = vadd.f32 0.041655596, %v739_v19  ;;  %v747_v27 = vadd.f32 0.008332121, %v746_v30  ;;  %v862_v15 = vsel %vm860_vm15, %v861_v61, %v857_v29  ;;  %v943_v28 = vshll.u32 %v1730_v4, %v934_v35 }
 0x124   :  { %v863_v53 = vadd.s32 %v862_v15, %v858_v22  ;;  %v944_v36 = vshrl.u32 %v1731_v6, %v2234_v41  ;;  %v946_v46 = vshll.u32 %v1731_v6, %v934_v35  ;;  %v2248_v18 = vor.u32 %v938_v52, %v937_v42  ;;  %v2289_v22 = vld [vmem:[#allocation7] ss:$2 sm:$0xff] }
 0x125   :  { %v741_v20 = vmul.f32 %v740_v32, %v738_v10  ;;  %v748_v60 = vmul.f32 %v747_v27, %v738_v10  ;;  %v947_v50 = vshrl.u32 %v1732_v8, %v2234_v41  ;;  %v2252_v59 = vor.u32 %v941_v1, %v940_v12 }
 0x126   :  { %v864_v38 = vadd.s32 536870912, %v863_v53  ;;  %v949_v13 = vshll.u32 %v1732_v8, %v934_v35  ;;  %v950_v43 = vshrl.u32 %v1733_v17, %v2234_v41  ;;  %vm952_vm0 = vcmp.lt.s32.totalorder %v2242_v9, 1 }
 0x127   :  { %v742_v44 = vadd.f32 -0.4999988, %v741_v20  ;;  %v749_v39 = vadd.f32 -0.16666654, %v748_v60  ;;  %v948_v5 = vor.u32 %v947_v50, %v946_v46  ;;  %vm753_vm1 = vweird.f32 %v1796_v62  ;;  %v230_v60 = vpop.f32.mrf.mxu1 }
 0x128   :  { %v2259_v58 = vshrl.u32 %v864_v38, 30  ;;  %v945_v24 = vor.u32 %v944_v36, %v943_v28  ;;  %vm955_vm2 = vcmp.lt.s32.totalorder %v2242_v9, 4  ;;  %vm2262_vm3 = vcmp.gt.f32.partialorder %v278_v40, 0.5 }
 0x129   :  { %v743_v16 = vmul.f32 %v742_v44, %v738_v10  ;;  %v750_v51 = vmul.f32 %v749_v39, %v738_v10  ;;  %vm954_vm4 = vcmp.lt.s32.totalorder %v2242_v9, 3  ;;  %vm756_vm5 = vcmp.lt.s32.totalorder %v2229_v37, 2 }
 0x12a   :  { %v866_v49 = vshll.u32 %v2259_v58, 30  ;;  %v951_v54 = vor.u32 %v950_v43, %v949_v13  ;;  %v960_v45 = vsel %vm952_vm0, %v2248_v18, %v2252_v59  ;;  %v961_v3 = vsel %vm955_vm2, %v948_v5, 920167782 }
 0x12b   :  { %v744_v63 = vadd.f32 1.0, %v743_v16  ;;  %v751_v31 = vadd.f32 1.0, %v750_v51  ;;  %v2275_v56 = vshll.u32 %v928_v48, 8  ;;  %vm757_vm6 = vcmp.eq.s32.totalorder %v2229_v37, 0 }
 0x12c   :  { %v867_v21 = vsub.s32 %v863_v53, %v866_v49  ;;  %vm953_vm7 = vcmp.lt.s32.totalorder %v2242_v9, 2  ;;  %v962_v35 = vsel %vm954_vm4, %v945_v24, %v961_v3  ;;  %vm760_vm8 = vcmp.eq.s32.totalorder %v2229_v37, 2 }
 0x12d   :  { %v752_v10 = vmul.f32 %v751_v31, %v736_v33  ;;  %v761_v7 = vxor.u32 2147483648, %v744_v63  ;;  %v963_v33 = vsel %vm953_vm7, %v960_v45, %v962_v35  ;;  %v964_v19 = vsel %vm952_vm0, %v2252_v59, %v945_v24 }
 0x12e   :  { %vm868_vm9 = vcmp.lt.s32.totalorder %v867_v21, 0  ;;  %v869_v30 = vsub.s32 0, %v867_v21  ;;  %v965_v29 = vsel %vm955_vm2, %v951_v54, 1326507024  ;;  %v98_v32 = vperm.slane %v2289_v22, 5 }
 0x12f   :  { %v758_v40 = vxor.u32 2147483648, %v752_v10  ;;  %v762_v61 = vsel %vm760_vm8, %v761_v7, %v752_v10  ;;  %v966_v42 = vsel %vm954_vm4, %v948_v5, %v965_v29  ;;  %v969_v48 = vand.u32 65535, %v2275_v56 }
 0x130   :  { %v870_v12 = vsel %vm868_vm9, %v869_v30, %v867_v21  ;;  %v967_v1 = vsel %vm953_vm7, %v964_v19, %v966_v42  ;;  %v994_v20 = vshrl.u32 %v963_v33, 16  ;;  %v970_v44 = vshrl.u32 %v2275_v56, 16 }
 0x131   :  { %v759_v27 = vsel %vm757_vm6, %v744_v63, %v758_v40  ;;  %v871_v53 = vclz %v870_v12  ;;  %v971_v28 = vand.u32 65535, %v967_v1  ;;  %v972_v36 = vshrl.u32 %v967_v1, 16 }
 0x132   :  { %v763_v52 = vsel %vm756_vm5, %v759_v27, %v762_v61  ;;  %v993_v37 = vand.u32 65535, %v963_v33  ;;  %v2305_v38 = vadd.f32 %v230_v60, %v98_v32  ;;  %v859_v13 = vadd.s32 %v2224_v14, %v2222_v34 }
 0x133   :  { %v764_v15 = vsel %vm753_vm1, nan, %v763_v52  ;;  %v1592_v39 = vadd.s32 4294967294, %v871_v53  ;;  %v974_v50 = vmul.u32 %v972_v36, %v969_v48  ;;  %v936_v43 = vshrl.u32 %v1728_v0, %v2234_v41 }
 0x134   :  { %v1542_v46 = vsel %vm2262_vm3, %v1796_v62, %v764_v15  ;;  %v975_v16 = vmul.u32 %v971_v28, %v970_v44  ;;  %v996_v51 = vmul.u32 %v994_v20, %v969_v48  ;;  %v957_v62 = vsel %vm955_vm2, %v945_v24, 2102212464 }
 0x135   :  { %1550 = vst [vmem:[#allocation8 + $0x10] sm:$0xff] %v1542_v46  ;;  %vm1593_vm12 = vcmp.lt.s32.totalorder %v1592_v39, 0  ;;  %v973_v5 = vmul.u32 %v971_v28, %v969_v48  ;;  %v977_v26 = vshll.u32 %v974_v50, 16  ;;  %v976_v31 = vmul.u32 %v972_v36, %v970_v44 }
 0x136   :  { %v874_v63 = vsel %vm1593_vm12, 0, %v1592_v39  ;;  %v997_v49 = vmul.u32 %v993_v37, %v970_v44  ;;  %v999_v54 = vshll.u32 %v996_v51, 16  ;;  %v995_v7 = vmul.u32 %v993_v37, %v969_v48 }
 0x137   :  { %v875_v45 = vsub.s32 32, %v874_v63  ;;  %v879_v10 = vsub.s32 4294967266, %v874_v63  ;;  %vm981_vm10 = vc.u32 %v973_v5, %v977_v26  ;;  %v979_v34 = vshll.u32 %v975_v16, 16 }
 0x138   :  { %v982_v14 = vsel %vm981_vm10, 1, %v1734_v23  ;;  %v983_v41 = vadd.s32 %v977_v26, %v973_v5  ;;  %v998_v3 = vmul.u32 %v994_v20, %v970_v44  ;;  %v876_v35 = vshll.u32 %v867_v21, %v874_v63 }
 0x139   :  { %v877_v40 = vshrl.u32 %v859_v13, %v875_v45  ;;  %v880_v33 = vadd.s32 127, %v879_v10  ;;  %v984_v19 = vadd.s32 %v982_v14, %v976_v31  ;;  %v1001_v24 = vshll.u32 %v997_v49, 16 }
 0x13a   :  { %vm985_vm11 = vc.u32 %v983_v41, %v979_v34  ;;  %vm1003_vm13 = vc.u32 %v995_v7, %v999_v54  ;;  %v1005_v30 = vadd.s32 %v999_v54, %v995_v7  ;;  %v978_v42 = vshrl.u32 %v974_v50, 16 }
 0x13b   :  { %v878_v29 = vor.u32 %v877_v40, %v876_v35  ;;  %v881_v32 = vshll.u32 %v880_v33, 23  ;;  %v986_v27 = vsel %vm985_vm11, 1, %v1734_v23  ;;  %v1004_v61 = vsel %vm1003_vm13, 1, %v1734_v23 }
 0x13c   :  { %v988_v48 = vadd.s32 %v986_v27, %v984_v19  ;;  %v1006_v52 = vadd.s32 %v1004_v61, %v998_v3  ;;  %vm1007_vm14 = vc.u32 %v1005_v30, %v1001_v24  ;;  %v889_v21 = vsub.s32 4, %v2259_v58  ;;  %v250_v3 = vpop.f32.mrf.mxu2 }
 0x13d   :  { %v882_v12 = vor.u32 4788187, %v881_v32  ;;  %v956_v1 = vsel %vm952_vm0, %v936_v43, %v2248_v18  ;;  %v1008_v20 = vsel %vm1007_vm14, 1, %v1734_v23  ;;  %v980_v60 = vshrl.u32 %v975_v16, 16 }
 0x13e   :  { %v989_v15 = vadd.s32 %v988_v48, %v978_v42  ;;  %v1000_v53 = vshrl.u32 %v996_v51, 16  ;;  %v1010_v28 = vadd.s32 %v1008_v20, %v1006_v52  ;;  %v885_v46 = vcvt.s32.f32 %v878_v29 }
 0x13f   :  { %v883_v36 = vand.u32 2147483647, %v882_v12  ;;  %v958_v44 = vsel %vm954_vm4, %v2252_v59, %v957_v62  ;;  %v1078_v37 = vand.u32 2139095040, %v2305_v38  ;;  %v1002_v50 = vshrl.u32 %v997_v49, 16 }
 0x140   :  { %v990_v39 = vadd.s32 %v989_v15, %v980_v60  ;;  %v1011_v13 = vadd.s32 %v1010_v28, %v1000_v53  ;;  %v1075_v5 = vand.u32 2147483647, %v2305_v38  ;;  %vm767_vm15 = vcmp.lt.s32.totalorder %v2076_v57, 0 }
 0x141   :  { %v886_v18 = vmul.f32 %v885_v46, %v883_v36  ;;  %v1009_v43 = vadd.s32 %v1005_v30, %v1001_v24  ;;  %v1079_v16 = vshrl.u32 %v1078_v37, 23  ;;  %v890_v51 = vsel %vm767_vm15, %v889_v21, %v2259_v58 }
 0x142   :  { %v959_v26 = vsel %vm953_vm7, %v956_v1, %v958_v44  ;;  %v1012_v63 = vadd.s32 %v1011_v13, %v1002_v50  ;;  %vm766_vm1 = vcmp.le.f32.partialorder %v765_v11, 0.7853982  ;;  %v1082_v49 = vand.u32 8388607, %v1075_v5 }
 0x143   :  { %v887_v31 = vxor.u32 2147483648, %v886_v18  ;;  %vm1015_vm0 = vc.u32 %v990_v39, %v1009_v43  ;;  %v1597_v59 = vadd.s32 4294967169, %v1079_v16  ;;  %v892_v45 = vsel %vm766_vm1, 0, %v890_v51 }
 0x144   :  { %v1016_v62 = vadd.s32 1, %v1012_v63  ;;  %v1013_v10 = vmul.u32 %v2275_v56, %v959_v26  ;;  %v99_v34 = vperm.slane %v2289_v22, 6  ;;  %v909_v35 = vadd.s32 3, %v892_v45 }
 0x145   :  { %v888_v54 = vsel %vm767_vm15, %v887_v31, %v886_v18  ;;  %v1085_v7 = vadd.s32 1, %v1597_v59  ;;  %v1083_v11 = vor.u32 8388608, %v1082_v49  ;;  %v279_v61 = vperm.slane %v1974_v47, 3 }
 0x146   :  { %v891_v58 = vsel %vm766_vm1, %v2076_v57, %v888_v54  ;;  %v1017_v9 = vsel %vm1015_vm0, %v1016_v62, %v1012_v63  ;;  %v2337_v29 = vadd.f32 %v250_v3, %v99_v34  ;;  %v2342_v42 = vand.u32 3, %v909_v35 }
 0x147   :  { %v893_v14 = vmul.f32 %v891_v58, %v891_v58  ;;  %v1018_v41 = vadd.s32 %v1017_v9, %v1013_v10  ;;  %vm1086_vm2 = vcmp.gt.s32.totalorder %v1085_v7, 0  ;;  %v2344_v52 = vshll.u32 %v1083_v11, 8 }
 0x148   :  { %v1087_v40 = vsel %vm1086_vm2, %v1085_v7, 0  ;;  %v2346_v1 = vadd.s32 %v1009_v43, %v990_v39  ;;  %v1230_v28 = vand.u32 2147483647, %v2337_v29  ;;  %vm912_vm3 = vcmp.eq.s32.totalorder %v2342_v42, 0 }
 0x149   :  { %v894_v33 = vmul.f32 -0.001358992, %v893_v14  ;;  %v901_v19 = vmul.f32 -0.00019511016, %v893_v14  ;;  %v1019_v24 = vadd.s32 536870912, %v1018_v41  ;;  %v1089_v30 = vand.u32 31, %v1087_v40 }
 0x14a   :  { %vm915_vm4 = vcmp.eq.s32.totalorder %v2342_v42, 2  ;;  %v2358_v37 = vshrl.u32 %v1087_v40, 5  ;;  %v2363_v13 = vand.u32 65535, %v2344_v52  ;;  %vm2365_vm5 = vcmp.gt.f32.partialorder %v279_v61, 0.5 }
 0x14b   :  { %v895_v56 = vadd.f32 0.041655596, %v894_v33  ;;  %v902_v32 = vadd.f32 0.008332121, %v901_v19  ;;  %v2339_v27 = vshrl.u32 %v1019_v24, 30  ;;  %v1090_v48 = vsub.s32 32, %v1089_v30 }
 0x14c   :  { %v1092_v60 = vshll.u32 %v1728_v0, %v1089_v30  ;;  %v1095_v53 = vshll.u32 %v1729_v2, %v1089_v30  ;;  %v1098_v39 = vshll.u32 %v1730_v4, %v1089_v30  ;;  %vm911_vm6 = vcmp.lt.s32.totalorder %v2342_v42, 2 }
 0x14d   :  { %v896_v12 = vmul.f32 %v895_v56, %v893_v14  ;;  %v903_v21 = vmul.f32 %v902_v32, %v893_v14  ;;  %v1021_v20 = vshll.u32 %v2339_v27, 30  ;;  %v1093_v15 = vshrl.u32 %v1729_v2, %v1090_v48 }
 0x14e   :  { %v1096_v44 = vshrl.u32 %v1730_v4, %v1090_v48  ;;  %v1099_v50 = vshrl.u32 %v1731_v6, %v1090_v48  ;;  %vm908_vm8 = vweird.f32 %v2076_v57  ;;  %v1101_v63 = vshll.u32 %v1731_v6, %v1089_v30 }
 0x14f   :  { %v897_v47 = vadd.f32 -0.4999988, %v896_v12  ;;  %v904_v36 = vadd.f32 -0.16666654, %v903_v21  ;;  %v2353_v46 = vsub.s32 %v1018_v41, %v1021_v20  ;;  %v1094_v26 = vor.u32 %v1093_v15, %v1092_v60 }
 0x150   :  { %v1102_v31 = vshrl.u32 %v1732_v8, %v1090_v48  ;;  %v1233_v59 = vand.u32 2139095040, %v2337_v29  ;;  %v1097_v45 = vor.u32 %v1096_v44, %v1095_v53  ;;  %vm922_vm9 = vcmp.lt.s32.totalorder %v2136_v55, 0 }
 0x151   :  { %v898_v43 = vmul.f32 %v897_v47, %v893_v14  ;;  %v905_v16 = vmul.f32 %v904_v36, %v893_v14  ;;  %vm1023_vm7 = vcmp.lt.s32.totalorder %v2353_v46, 0  ;;  %v1024_v51 = vsub.s32 0, %v2353_v46 }
 0x152   :  { %v1103_v7 = vor.u32 %v1102_v31, %v1101_v63  ;;  %v1104_v9 = vshll.u32 %v1732_v8, %v1089_v30  ;;  %v1105_v34 = vshrl.u32 %v1733_v17, %v1090_v48  ;;  %v1100_v3 = vor.u32 %v1099_v50, %v1098_v39 }
 0x153   :  { %v899_v62 = vadd.f32 1.0, %v898_v43  ;;  %v906_v49 = vadd.f32 1.0, %v905_v16  ;;  %v1025_v54 = vsel %vm1023_vm7, %v1024_v51, %v2353_v46  ;;  %vm1107_vm12 = vcmp.lt.s32.totalorder %v2358_v37, 1 }
 0x154   :  { %v1026_v10 = vclz %v1025_v54  ;;  %vm1109_vm10 = vcmp.lt.s32.totalorder %v2358_v37, 3  ;;  %v1125_v11 = vshrl.u32 %v2344_v52, 16  ;;  %v1234_v40 = vshrl.u32 %v1233_v59, 23 }
 0x155   :  { %v907_v14 = vmul.f32 %v906_v49, %v891_v58  ;;  %v916_v41 = vxor.u32 2147483648, %v899_v62  ;;  %vm2385_vm11 = vcmp.le.f32.partialorder %v920_v25, 0.7853982  ;;  %v1044_v24 = vsub.s32 4, %v2339_v27 }
 0x156   :  { %v1595_v35 = vadd.s32 4294967294, %v1026_v10  ;;  %v1091_v58 = vshrl.u32 %v1728_v0, %v1090_v48  ;;  %vm1110_vm13 = vcmp.lt.s32.totalorder %v2358_v37, 4  ;;  %v1106_v30 = vor.u32 %v1105_v34, %v1104_v9 }
 0x157   :  { %v913_v33 = vxor.u32 2147483648, %v907_v14  ;;  %v1115_v56 = vsel %vm1107_vm12, %v1094_v26, %v1097_v45  ;;  %v1116_v32 = vsel %vm1110_vm13, %v1103_v7, 920167782  ;;  %v917_v61 = vsel %vm915_vm4, %v916_v41, %v907_v14 }
 0x158   :  { %vm1596_vm14 = vcmp.lt.s32.totalorder %v1595_v35, 0  ;;  %v1117_v48 = vsel %vm1109_vm10, %v1100_v3, %v1116_v32  ;;  %vm1108_vm15 = vcmp.lt.s32.totalorder %v2358_v37, 2  ;;  %v1119_v36 = vsel %vm1107_vm12, %v1097_v45, %v1100_v3 }
 0x159   :  { %v914_v25 = vsel %vm912_vm3, %v899_v62, %v913_v33  ;;  %v1029_v12 = vsel %vm1596_vm14, 0, %v1595_v35  ;;  %v1118_v47 = vsel %vm1108_vm15, %v1115_v56, %v1117_v48  ;;  %v1120_v50 = vsel %vm1110_vm13, %v1106_v30, 1326507024 }
 0x15a   :  { %v918_v21 = vsel %vm911_vm6, %v914_v25, %v917_v61  ;;  %v1030_v20 = vsub.s32 32, %v1029_v12  ;;  %v1034_v60 = vsub.s32 4294967266, %v1029_v12  ;;  %v1031_v53 = vshll.u32 %v2353_v46, %v1029_v12 }
 0x15b   :  { %v919_v15 = vsel %vm908_vm8, nan, %v918_v21  ;;  %v2421_v46 = vsel %vm922_vm9, %v1044_v24, %v2339_v27  ;;  %v1121_v43 = vsel %vm1109_vm10, %v1103_v7, %v1120_v50  ;;  %v1148_v16 = vand.u32 65535, %v1118_v47 }
 0x15c   :  { %v1543_v42 = vsel %vm2365_vm5, %v2076_v57, %v919_v15  ;;  %v1032_v44 = vshrl.u32 %v2346_v1, %v1030_v20  ;;  %v1035_v39 = vadd.s32 127, %v1034_v60  ;;  %v1149_v51 = vshrl.u32 %v1118_v47, 16 }
 0x15d   :  { %1551 = vst [vmem:[#allocation8 + $0x18] sm:$0xff] %v1543_v42  ;;  %v1112_v57 = vsel %vm1110_vm13, %v1100_v3, 2102212464  ;;  %v1122_v1 = vsel %vm1108_vm15, %v1119_v36, %v1121_v43  ;;  %v2432_v27 = vand.u32 8388607, %v1230_v28  ;;  %v1047_v54 = vsel %vm2385_vm11, 0, %v2421_v46 }
 0x15e   :  { %v1033_v63 = vor.u32 %v1032_v44, %v1031_v53  ;;  %v1036_v18 = vshll.u32 %v1035_v39, 23  ;;  %v1126_v31 = vand.u32 65535, %v1122_v1  ;;  %v1127_v59 = vshrl.u32 %v1122_v1, 16  ;;  %v2455_v1 = vld [vmem:[#allocation7 + $0x1] ss:$2 sm:$0xff] }
 0x15f   :  { %v1151_v62 = vmul.u32 %v1149_v51, %v2363_v13  ;;  %v1111_v10 = vsel %vm1107_vm12, %v1091_v58, %v1094_v26  ;;  %v1152_v7 = vmul.u32 %v1148_v16, %v1125_v11  ;;  %v1113_v9 = vsel %vm1109_vm10, %v1097_v45, %v1112_v57 }
 0x160   :  { %v1037_v49 = vor.u32 4788187, %v1036_v18  ;;  %v1129_v34 = vmul.u32 %v1127_v59, %v2363_v13  ;;  %v1130_v14 = vmul.u32 %v1126_v31, %v1125_v11  ;;  %v1600_v41 = vadd.s32 4294967169, %v1234_v40 }
 0x161   :  { %v1040_v35 = vcvt.s32.f32 %v1033_v63  ;;  %v1150_v33 = vmul.u32 %v1148_v16, %v2363_v13  ;;  %v1154_v24 = vshll.u32 %v1151_v62, 16  ;;  %v1128_v30 = vmul.u32 %v1126_v31, %v2363_v13 }
 0x162   :  { %v1038_v3 = vand.u32 2147483647, %v1037_v49  ;;  %v1131_v56 = vmul.u32 %v1127_v59, %v1125_v11  ;;  %v1132_v32 = vshll.u32 %v1129_v34, 16  ;;  %v1153_v25 = vmul.u32 %v1149_v51, %v1125_v11 }
 0x163   :  { %v1133_v26 = vshrl.u32 %v1129_v34, 16  ;;  %v1134_v58 = vshll.u32 %v1130_v14, 16  ;;  %v1156_v12 = vshll.u32 %v1152_v7, 16  ;;  %vm1158_vm1 = vc.u32 %v1150_v33, %v1154_v24 }
 0x164   :  { %v1041_v61 = vmul.f32 %v1040_v35, %v1038_v3  ;;  %vm1136_vm0 = vc.u32 %v1128_v30, %v1132_v32  ;;  %v1138_v45 = vadd.s32 %v1132_v32, %v1128_v30  ;;  %v1160_v48 = vadd.s32 %v1154_v24, %v1150_v33 }
 0x165   :  { %v1137_v40 = vsel %vm1136_vm0, 1, %v1734_v23  ;;  %v1159_v20 = vsel %vm1158_vm1, 1, %v1734_v23  ;;  %v1240_v60 = vadd.s32 1, %v1600_v41  ;;  %v1155_v47 = vshrl.u32 %v1151_v62, 16 }
 0x166   :  { %v1042_v21 = vxor.u32 2147483648, %v1041_v61  ;;  %v1139_v15 = vadd.s32 %v1137_v40, %v1131_v56  ;;  %vm1140_vm2 = vc.u32 %v1138_v45, %v1134_v58  ;;  %v1161_v13 = vadd.s32 %v1159_v20, %v1153_v25 }
 0x167   :  { %vm1162_vm3 = vc.u32 %v1160_v48, %v1156_v12  ;;  %v1141_v53 = vsel %vm1140_vm2, 1, %v1734_v23  ;;  %vm1241_vm4 = vcmp.gt.s32.totalorder %v1240_v60, 0  ;;  %v1114_v46 = vsel %vm1108_vm15, %v1111_v10, %v1113_v9 }
 0x168   :  { %v1043_v11 = vsel %vm922_vm9, %v1042_v21, %v1041_v61  ;;  %v1163_v36 = vsel %vm1162_vm3, 1, %v1734_v23  ;;  %v1143_v44 = vadd.s32 %v1141_v53, %v1139_v15  ;;  %v1135_v43 = vshrl.u32 %v1130_v14, 16 }
 0x169   :  { %v1046_v42 = vsel %vm2385_vm11, %v2136_v55, %v1043_v11  ;;  %v1165_v39 = vadd.s32 %v1163_v36, %v1161_v13  ;;  %v1242_v16 = vsel %vm1241_vm4, %v1240_v60, 0  ;;  %v1157_v63 = vshrl.u32 %v1152_v7, 16 }
 0x16a   :  { %v1048_v50 = vmul.f32 %v1046_v42, %v1046_v42  ;;  %v1144_v51 = vadd.s32 %v1143_v44, %v1133_v26  ;;  %v1244_v57 = vand.u32 31, %v1242_v16  ;;  %v280_v31 = vperm.slane %v2455_v1, 4 }
 0x16b   :  { %v1166_v18 = vadd.s32 %v1165_v39, %v1155_v47  ;;  %v1064_v62 = vadd.s32 3, %v1047_v54  ;;  %v2460_v34 = vadd.s32 %v1160_v48, %v1156_v12  ;;  %v1168_v7 = vmul.u32 %v2344_v52, %v1114_v46 }
 0x16c   :  { %v1049_v59 = vmul.f32 -0.001358992, %v1048_v50  ;;  %v1056_v19 = vmul.f32 -0.00019511016, %v1048_v50  ;;  %v2458_v49 = vadd.s32 %v1144_v51, %v1135_v43  ;;  %v2462_v37 = vsub.s32 32, %v1244_v57 }
 0x16d   :  { %v1167_v41 = vadd.s32 %v1166_v18, %v1157_v63  ;;  %v2465_v14 = vshrl.u32 %v1242_v16, 5  ;;  %v1247_v35 = vshll.u32 %v1728_v0, %v1244_v57  ;;  %v1250_v54 = vshll.u32 %v1729_v2, %v1244_v57 }
 0x16e   :  { %v1050_v10 = vadd.f32 0.041655596, %v1049_v59  ;;  %v1057_v9 = vadd.f32 0.008332121, %v1056_v19  ;;  %vm1170_vm5 = vc.u32 %v2458_v49, %v2460_v34  ;;  %v1248_v30 = vshrl.u32 %v1729_v2, %v2462_v37 }
 0x16f   :  { %v1171_v3 = vadd.s32 1, %v1167_v41  ;;  %v1251_v56 = vshrl.u32 %v1730_v4, %v2462_v37  ;;  %v1254_v52 = vshrl.u32 %v1731_v6, %v2462_v37  ;;  %v1256_v25 = vshll.u32 %v1731_v6, %v1244_v57 }
 0x170   :  { %v1051_v33 = vmul.f32 %v1050_v10, %v1048_v50  ;;  %v1058_v24 = vmul.f32 %v1057_v9, %v1048_v50  ;;  %v1257_v61 = vshrl.u32 %v1732_v8, %v2462_v37  ;;  %v1253_v45 = vshll.u32 %v1730_v4, %v1244_v57 }
 0x171   :  { %v1172_v32 = vsel %vm1170_vm5, %v1171_v3, %v1167_v41  ;;  %v2481_v48 = vor.u32 %v1248_v30, %v1247_v35  ;;  %v2483_v21 = vor.u32 %v1251_v56, %v1250_v54  ;;  %v1259_v20 = vshll.u32 %v1732_v8, %v1244_v57 }
 0x172   :  { %v1052_v26 = vadd.f32 -0.4999988, %v1051_v33  ;;  %v1059_v58 = vadd.f32 -0.16666654, %v1058_v24  ;;  %v1173_v12 = vadd.s32 %v1172_v32, %v1168_v7  ;;  %v1258_v40 = vor.u32 %v1257_v61, %v1256_v25 }
 0x173   :  { %v1260_v11 = vshrl.u32 %v1733_v17, %v2462_v37  ;;  %vm1063_vm6 = vweird.f32 %v2136_v55  ;;  %v1065_v53 = vand.u32 3, %v1064_v62  ;;  %v1238_v47 = vor.u32 8388608, %v2432_v27 }
 0x174   :  { %v1053_v60 = vmul.f32 %v1052_v26, %v1048_v50  ;;  %v1060_v15 = vmul.f32 %v1059_v58, %v1048_v50  ;;  %v1174_v13 = vadd.s32 536870912, %v1173_v12  ;;  %v2490_v36 = vor.u32 %v1254_v52, %v1253_v45 }
 0x175   :  { %vm1265_vm7 = vcmp.lt.s32.totalorder %v2465_v14, 4  ;;  %v1261_v43 = vor.u32 %v1260_v11, %v1259_v20  ;;  %vm2495_vm8 = vcmp.gt.f32.partialorder %v280_v31, 0.5  ;;  %vm1262_vm9 = vcmp.lt.s32.totalorder %v2465_v14, 1 }
 0x176   :  { %v1054_v44 = vadd.f32 1.0, %v1053_v60  ;;  %v1061_v39 = vadd.f32 1.0, %v1060_v15  ;;  %v2493_v46 = vshrl.u32 %v1174_v13, 30  ;;  %vm1264_vm12 = vcmp.lt.s32.totalorder %v2465_v14, 3 }
 0x177   :  { %v1271_v27 = vsel %vm1265_vm7, %v1258_v40, 920167782  ;;  %v1270_v18 = vsel %vm1262_vm9, %v2481_v48, %v2483_v21  ;;  %vm1066_vm10 = vcmp.lt.s32.totalorder %v1065_v53, 2  ;;  %v1275_v31 = vsel %vm1265_vm7, %v1261_v43, 1326507024 }
 0x178   :  { %v1062_v16 = vmul.f32 %v1061_v39, %v1046_v42  ;;  %v1071_v51 = vxor.u32 2147483648, %v1054_v44  ;;  %v1176_v63 = vshll.u32 %v2493_v46, 30  ;;  %v1272_v57 = vsel %vm1264_vm12, %v2490_v36, %v1271_v27 }
 0x179   :  { %v2513_v59 = vshll.u32 %v1238_v47, 8  ;;  %vm1263_vm11 = vcmp.lt.s32.totalorder %v2465_v14, 2  ;;  %v1274_v62 = vsel %vm1262_vm9, %v2483_v21, %v2490_v36  ;;  %vm1067_vm13 = vcmp.eq.s32.totalorder %v1065_v53, 0 }
 0x17a   :  { %v1068_v19 = vxor.u32 2147483648, %v1062_v16  ;;  %v1177_v42 = vsub.s32 %v1173_v12, %v1176_v63  ;;  %vm1070_vm14 = vcmp.eq.s32.totalorder %v1065_v53, 2  ;;  %v1273_v41 = vsel %vm1263_vm11, %v1270_v18, %v1272_v57 }
 0x17b   :  { %v1276_v10 = vsel %vm1264_vm12, %v1258_v40, %v1275_v31  ;;  %v1072_v7 = vsel %vm1070_vm14, %v1071_v51, %v1062_v16  ;;  %v1279_v33 = vand.u32 65535, %v2513_v59  ;;  %v1303_v24 = vand.u32 65535, %v1273_v41 }
 0x17c   :  { %v1069_v9 = vsel %vm1067_vm13, %v1054_v44, %v1068_v19  ;;  %vm1178_vm15 = vcmp.lt.s32.totalorder %v1177_v42, 0  ;;  %v1179_v3 = vsub.s32 0, %v1177_v42  ;;  %v1277_v54 = vsel %vm1263_vm11, %v1274_v62, %v1276_v10 }
 0x17d   :  { %v1073_v35 = vsel %vm1066_vm10, %v1069_v9, %v1072_v7  ;;  %v1281_v32 = vand.u32 65535, %v1277_v54  ;;  %v1304_v52 = vshrl.u32 %v1273_v41, 16  ;;  %v1280_v26 = vshrl.u32 %v2513_v59, 16 }
 0x17e   :  { %v1074_v30 = vsel %vm1063_vm6, nan, %v1073_v35  ;;  %v1180_v56 = vsel %vm1178_vm15, %v1179_v3, %v1177_v42  ;;  %v1282_v58 = vshrl.u32 %v1277_v54, 16  ;;  %v100_v20 = vperm.slane %v2289_v22, 7  ;;  %v270_v22 = vpop.f32.mrf.mxu3 }
 0x17f   :  { %v1544_v25 = vsel %vm2495_vm8, %v2136_v55, %v1074_v30  ;;  %v1181_v61 = vclz %v1180_v56  ;;  %v1285_v40 = vmul.u32 %v1281_v32, %v1280_v26  ;;  %v1169_v60 = vadd.s32 %v2460_v34, %v2458_v49 }
 0x180   :  { %1552 = vst [vmem:[#allocation8 + $0x20] sm:$0xff] %v1544_v25  ;;  %v1284_v45 = vmul.u32 %v1282_v58, %v1279_v33  ;;  %v1246_v15 = vshrl.u32 %v1728_v0, %v2462_v37  ;;  %v1306_v13 = vmul.u32 %v1304_v52, %v1279_v33  ;;  %v1307_v11 = vmul.u32 %v1303_v24, %v1280_v26 }
 0x181   :  { %v1598_v12 = vadd.s32 4294967294, %v1181_v61  ;;  %v1283_v55 = vmul.u32 %v1281_v32, %v1279_v33  ;;  %v1305_v47 = vmul.u32 %v1303_v24, %v1279_v33  ;;  %v1286_v39 = vmul.u32 %v1282_v58, %v1280_v26 }
 0x182   :  { %v1287_v53 = vshll.u32 %v1284_v45, 16  ;;  %v1308_v43 = vmul.u32 %v1304_v52, %v1280_v26  ;;  %v1309_v50 = vshll.u32 %v1306_v13, 16  ;;  %v1289_v51 = vshll.u32 %v1285_v40, 16 }
 0x183   :  { %vm1599_vm0 = vcmp.lt.s32.totalorder %v1598_v12, 0  ;;  %v1311_v37 = vshll.u32 %v1307_v11, 16  ;;  %v2541_v41 = vadd.f32 %v270_v22, %v100_v20  ;;  %v1288_v35 = vshrl.u32 %v1284_v45, 16 }
 0x184   :  { %v1184_v44 = vsel %vm1599_vm0, 0, %v1598_v12  ;;  %vm1291_vm1 = vc.u32 %v1283_v55, %v1287_v53  ;;  %v1293_v34 = vadd.s32 %v1287_v53, %v1283_v55  ;;  %vm1313_vm2 = vc.u32 %v1305_v47, %v1309_v50 }
 0x185   :  { %v1185_v27 = vsub.s32 32, %v1184_v44  ;;  %v1189_v16 = vsub.s32 4294967266, %v1184_v44  ;;  %v1186_v63 = vshll.u32 %v1177_v42, %v1184_v44  ;;  %v1292_v49 = vsel %vm1291_vm1, 1, %v1734_v23 }
 0x186   :  { %v1294_v31 = vadd.s32 %v1292_v49, %v1286_v39  ;;  %vm1295_vm3 = vc.u32 %v1293_v34, %v1289_v51  ;;  %v1314_v19 = vsel %vm1313_vm2, 1, %v1734_v23  ;;  %v1315_v62 = vadd.s32 %v1309_v50, %v1305_v47 }
 0x187   :  { %v1187_v18 = vshrl.u32 %v1169_v60, %v1185_v27  ;;  %v1190_v57 = vadd.s32 127, %v1189_v16  ;;  %v1296_v7 = vsel %vm1295_vm3, 1, %v1734_v23  ;;  %v1316_v3 = vadd.s32 %v1314_v19, %v1308_v43 }
 0x188   :  { %v1267_v42 = vsel %vm1265_vm7, %v2490_v36, 2102212464  ;;  %v1298_v54 = vadd.s32 %v1296_v7, %v1294_v31  ;;  %vm1317_vm4 = vc.u32 %v1315_v62, %v1311_v37  ;;  %v1199_v24 = vsub.s32 4, %v2493_v46 }
 0x189   :  { %v1188_v10 = vor.u32 %v1187_v18, %v1186_v63  ;;  %v1191_v9 = vshll.u32 %v1190_v57, 23  ;;  %v1266_v30 = vsel %vm1262_vm9, %v1246_v15, %v2481_v48  ;;  %v1318_v56 = vsel %vm1317_vm4, 1, %v1734_v23 }
 0x18a   :  { %v1290_v32 = vshrl.u32 %v1285_v40, 16  ;;  %v1299_v52 = vadd.s32 %v1298_v54, %v1288_v35  ;;  %v1310_v25 = vshrl.u32 %v1306_v13, 16  ;;  %v1320_v61 = vadd.s32 %v1318_v56, %v1316_v3 }
 0x18b   :  { %v1192_v33 = vor.u32 4788187, %v1191_v9  ;;  %v1195_v58 = vcvt.s32.f32 %v1188_v10  ;;  %v1268_v36 = vsel %vm1264_vm12, %v2483_v21, %v1267_v42  ;;  %v1388_v12 = vand.u32 2139095040, %v2541_v41 }
 0x18c   :  { %v2556_v45 = vadd.s32 %v1299_v52, %v1290_v32  ;;  %v1312_v20 = vshrl.u32 %v1307_v11, 16  ;;  %v1321_v60 = vadd.s32 %v1320_v61, %v1310_v25  ;;  %vm1077_vm5 = vcmp.lt.s32.totalorder %v2305_v38, 0 }
 0x18d   :  { %v1193_v26 = vand.u32 2147483647, %v1192_v33  ;;  %v2559_v15 = vadd.s32 %v1315_v62, %v1311_v37  ;;  %v1389_v40 = vshrl.u32 %v1388_v12, 23  ;;  %v1200_v13 = vsel %vm1077_vm5, %v1199_v24, %v2493_v46 }
 0x18e   :  { %v1269_v55 = vsel %vm1263_vm11, %v1266_v30, %v1268_v36  ;;  %v1322_v53 = vadd.s32 %v1321_v60, %v1312_v20  ;;  %vm1076_vm7 = vcmp.le.f32.partialorder %v1075_v5, 0.7853982  ;;  %v1385_v14 = vand.u32 2147483647, %v2541_v41 }
 0x18f   :  { %v1196_v48 = vmul.f32 %v1195_v58, %v1193_v26  ;;  %vm1325_vm6 = vc.u32 %v2556_v45, %v2559_v15  ;;  %v1603_v21 = vadd.s32 4294967169, %v1389_v40  ;;  %v1202_v39 = vsel %vm1076_vm7, 0, %v1200_v13 }
 0x190   :  { %v1326_v11 = vadd.s32 1, %v1322_v53  ;;  %v1323_v43 = vmul.u32 %v2513_v59, %v1269_v55  ;;  %v1219_v22 = vadd.s32 3, %v1202_v39  ;;  %v1392_v5 = vand.u32 8388607, %v1385_v14 }
 0x191   :  { %v1197_v47 = vxor.u32 2147483648, %v1196_v48  ;;  %v1395_v50 = vadd.s32 1, %v1603_v21  ;;  %v281_v10 = vperm.slane %v2455_v1, 5  ;;  %vm1218_vm13 = vweird.f32 %v2305_v38 }
 0x192   :  { %v1327_v27 = vsel %vm1325_vm6, %v1326_v11, %v1322_v53  ;;  %v1220_v19 = vand.u32 3, %v1219_v22  ;;  %v1393_v42 = vor.u32 8388608, %v1392_v5  ;;  %v1324_v39 = vadd.s32 %v2559_v15, %v2556_v45 }
 0x193   :  { %v1198_v44 = vsel %vm1077_vm5, %v1197_v47, %v1196_v48  ;;  %v1328_v51 = vadd.s32 %v1327_v27, %v1323_v43  ;;  %vm1396_vm8 = vcmp.gt.s32.totalorder %v1395_v50, 0  ;;  %vm2590_vm12 = vcmp.gt.f32.partialorder %v281_v10, 0.5 }
 0x194   :  { %v1201_v46 = vsel %vm1076_vm7, %v2305_v38, %v1198_v44  ;;  %v1397_v63 = vsel %vm1396_vm8, %v1395_v50, 0  ;;  %vm1222_vm9 = vcmp.eq.s32.totalorder %v1220_v19, 0  ;;  %vm1221_vm10 = vcmp.lt.s32.totalorder %v1220_v19, 2 }
 0x195   :  { %v1203_v16 = vmul.f32 %v1201_v46, %v1201_v46  ;;  %v1329_v37 = vadd.s32 536870912, %v1328_v51  ;;  %v1399_v18 = vand.u32 31, %v1397_v63  ;;  %v2581_v24 = vshrl.u32 %v1397_v63, 5 }
 0x196   :  { %vm1225_vm14 = vcmp.eq.s32.totalorder %v1220_v19, 2  ;;  %v2614_v50 = vshll.u32 %v1393_v42, 8  ;;  %vm1232_vm4 = vcmp.lt.s32.totalorder %v2337_v29, 0  ;;  %vm2654_vm5 = vcmp.le.f32.partialorder %v1230_v28, 0.7853982 }
 0x197   :  { %v1204_v49 = vmul.f32 -0.001358992, %v1203_v16  ;;  %v1211_v34 = vmul.f32 -0.00019511016, %v1203_v16  ;;  %v2573_v31 = vshrl.u32 %v1329_v37, 30  ;;  %v2575_v62 = vsub.s32 32, %v1399_v18 }
 0x198   :  { %v1402_v30 = vshll.u32 %v1728_v0, %v1399_v18  ;;  %v1405_v36 = vshll.u32 %v1729_v2, %v1399_v18  ;;  %v1408_v12 = vshll.u32 %v1730_v4, %v1399_v18  ;;  %v1411_v20 = vshll.u32 %v1731_v6, %v1399_v18 }
 0x199   :  { %v1205_v57 = vadd.f32 0.041655596, %v1204_v49  ;;  %v1212_v59 = vadd.f32 0.008332121, %v1211_v34  ;;  %v1331_v3 = vshll.u32 %v2573_v31, 30  ;;  %v1403_v56 = vshrl.u32 %v1729_v2, %v2575_v62 }
 0x19a   :  { %v1406_v32 = vshrl.u32 %v1730_v4, %v2575_v62  ;;  %v1409_v52 = vshrl.u32 %v1731_v6, %v2575_v62  ;;  %v1412_v60 = vshrl.u32 %v1732_v8, %v2575_v62  ;;  %v1415_v55 = vshrl.u32 %v1733_v17, %v2575_v62 }
 0x19b   :  { %v1206_v9 = vmul.f32 %v1205_v57, %v1203_v16  ;;  %v1213_v7 = vmul.f32 %v1212_v59, %v1203_v16  ;;  %v2579_v33 = vsub.s32 %v1328_v51, %v1331_v3  ;;  %v2605_v47 = vor.u32 %v1403_v56, %v1402_v30 }
 0x19c   :  { %v2607_v21 = vor.u32 %v1406_v32, %v1405_v36  ;;  %v1413_v2 = vor.u32 %v1412_v60, %v1411_v20  ;;  %v2609_v44 = vor.u32 %v1409_v52, %v1408_v12  ;;  %v1414_v6 = vshll.u32 %v1732_v8, %v1399_v18 }
 0x19d   :  { %v1207_v35 = vadd.f32 -0.4999988, %v1206_v9  ;;  %v1214_v54 = vadd.f32 -0.16666654, %v1213_v7  ;;  %vm1333_vm11 = vcmp.lt.s32.totalorder %v2579_v33, 0  ;;  %v1334_v58 = vsub.s32 0, %v2579_v33 }
 0x19e   :  { %v1416_v27 = vor.u32 %v1415_v55, %v1414_v6  ;;  %vm1417_vm15 = vcmp.lt.s32.totalorder %v2581_v24, 1  ;;  %vm1420_vm0 = vcmp.lt.s32.totalorder %v2581_v24, 4  ;;  %vm1419_vm2 = vcmp.lt.s32.totalorder %v2581_v24, 3 }
 0x19f   :  { %v1208_v61 = vmul.f32 %v1207_v35, %v1203_v16  ;;  %v1215_v26 = vmul.f32 %v1214_v54, %v1203_v16  ;;  %v1335_v13 = vsel %vm1333_vm11, %v1334_v58, %v2579_v33  ;;  %v1425_v8 = vsel %vm1417_vm15, %v2605_v47, %v2607_v21 }
 0x1a0   :  { %v1336_v53 = vclz %v1335_v13  ;;  %v1426_v45 = vsel %vm1420_vm0, %v1413_v2, 920167782  ;;  %vm1418_vm3 = vcmp.lt.s32.totalorder %v2581_v24, 2  ;;  %v1429_v18 = vsel %vm1417_vm15, %v2607_v21, %v2609_v44 }
 0x1a1   :  { %v1209_v48 = vadd.f32 1.0, %v1208_v61  ;;  %v1216_v40 = vadd.f32 1.0, %v1215_v26  ;;  %v1427_v51 = vsel %vm1419_vm2, %v2609_v44, %v1426_v45  ;;  %v1430_v10 = vsel %vm1420_vm0, %v1416_v27, 1326507024 }
 0x1a2   :  { %v1601_v43 = vadd.s32 4294967294, %v1336_v53  ;;  %v1428_v5 = vsel %vm1418_vm3, %v1425_v8, %v1427_v51  ;;  %v1431_v9 = vsel %vm1419_vm2, %v1413_v2, %v1430_v10  ;;  %v1434_v7 = vand.u32 65535, %v2614_v50 }
 0x1a3   :  { %v1217_v11 = vmul.f32 %v1216_v40, %v1201_v46  ;;  %v1226_v4 = vxor.u32 2147483648, %v1209_v48  ;;  %v1458_v3 = vand.u32 65535, %v1428_v5  ;;  %v1459_v42 = vshrl.u32 %v1428_v5, 16 }
 0x1a4   :  { %vm1602_vm1 = vcmp.lt.s32.totalorder %v1601_v43, 0  ;;  %v1354_v26 = vsub.s32 4, %v2573_v31  ;;  %v1401_v60 = vshrl.u32 %v1728_v0, %v2575_v62 }
 0x1a5   :  { %v1223_v17 = vxor.u32 2147483648, %v1217_v11  ;;  %v1227_v46 = vsel %vm1225_vm14, %v1226_v4, %v1217_v11  ;;  %v1339_v16 = vsel %vm1602_vm1, 0, %v1601_v43  ;;  %v1461_v32 = vmul.u32 %v1459_v42, %v1434_v7 }
 0x1a6   :  { %v1340_v63 = vsub.s32 32, %v1339_v16  ;;  %v1344_v49 = vsub.s32 4294967266, %v1339_v16  ;;  %v1341_v37 = vshll.u32 %v2579_v33, %v1339_v16  ;;  %v1432_v33 = vsel %vm1418_vm3, %v1429_v18, %v1431_v9 }
 0x1a7   :  { %v1224_v15 = vsel %vm1222_vm9, %v1209_v48, %v1223_v17  ;;  %v1436_v30 = vand.u32 65535, %v1432_v33  ;;  %v1437_v56 = vshrl.u32 %v1432_v33, 16  ;;  %v1464_v48 = vshll.u32 %v1461_v32, 16 }
 0x1a8   :  { %v1228_v22 = vsel %vm1221_vm10, %v1224_v15, %v1227_v46  ;;  %v1342_v59 = vshrl.u32 %v1324_v39, %v1340_v63  ;;  %v1345_v19 = vadd.s32 127, %v1344_v49  ;;  %v1460_v53 = vmul.u32 %v1458_v3, %v1434_v7 }
 0x1a9   :  { %v1229_v34 = vsel %vm1218_vm13, nan, %v1228_v22  ;;  %v1439_v58 = vmul.u32 %v1437_v56, %v1434_v7  ;;  %v1438_v40 = vmul.u32 %v1436_v30, %v1434_v7  ;;  %v1422_v17 = vsel %vm1420_vm0, %v2609_v44, 2102212464 }
 0x1aa   :  { %v1545_v57 = vsel %vm2590_vm12, %v2305_v38, %v1229_v34  ;;  %v1343_v35 = vor.u32 %v1342_v59, %v1341_v37  ;;  %v1346_v54 = vshll.u32 %v1345_v19, 23  ;;  %v1435_v38 = vshrl.u32 %v2614_v50, 16 }
 0x1ab   :  { %1553 = vst [vmem:[#allocation8 + $0x28] sm:$0xff] %v1545_v57  ;;  %v1442_v55 = vshll.u32 %v1439_v58, 16  ;;  %vm1468_vm7 = vc.u32 %v1460_v53, %v1464_v48  ;;  %v1470_v39 = vadd.s32 %v1464_v48, %v1460_v53  ;;  %v1443_v15 = vshrl.u32 %v1439_v58, 16 }
 0x1ac   :  { %v1347_v52 = vor.u32 4788187, %v1346_v54  ;;  %v1462_v25 = vmul.u32 %v1458_v3, %v1435_v38  ;;  %v1440_v36 = vmul.u32 %v1436_v30, %v1435_v38  ;;  %v1350_v20 = vcvt.s32.f32 %v1343_v35 }
 0x1ad   :  { %v1441_v13 = vmul.u32 %v1437_v56, %v1435_v38  ;;  %v1463_v28 = vmul.u32 %v1459_v42, %v1435_v38  ;;  %vm1446_vm6 = vc.u32 %v1438_v40, %v1442_v55  ;;  %v1448_v6 = vadd.s32 %v1442_v55, %v1438_v40 }
 0x1ae   :  { %v1348_v12 = vand.u32 2147483647, %v1347_v52  ;;  %v1444_v11 = vshll.u32 %v1440_v36, 16  ;;  %v1466_v4 = vshll.u32 %v1462_v25, 16  ;;  %v1447_v0 = vsel %vm1446_vm6, 1, %v1734_v23 }
 0x1af   :  { %v1469_v62 = vsel %vm1468_vm7, 1, %v1734_v23  ;;  %v1449_v27 = vadd.s32 %v1447_v0, %v1441_v13  ;;  %v1465_v22 = vshrl.u32 %v1461_v32, 16  ;;  %v1421_v34 = vsel %vm1417_vm15, %v1401_v60, %v2605_v47 }
 0x1b0   :  { %v1351_v2 = vmul.f32 %v1350_v20, %v1348_v12  ;;  %vm1450_vm8 = vc.u32 %v1448_v6, %v1444_v11  ;;  %v1471_v8 = vadd.s32 %v1469_v62, %v1463_v28  ;;  %vm1472_vm9 = vc.u32 %v1470_v39, %v1466_v4 }
 0x1b1   :  { %v1451_v46 = vsel %vm1450_vm8, 1, %v1734_v23  ;;  %v1473_v16 = vsel %vm1472_vm9, 1, %v1734_v23  ;;  %v1423_v37 = vsel %vm1419_vm2, %v2607_v21, %v1422_v17  ;;  %v1445_v5 = vshrl.u32 %v1440_v36, 16 }
 0x1b2   :  { %v1352_v43 = vxor.u32 2147483648, %v1351_v2  ;;  %v1453_v51 = vadd.s32 %v1451_v46, %v1449_v27  ;;  %v1475_v63 = vadd.s32 %v1473_v16, %v1471_v8  ;;  %v1467_v57 = vshrl.u32 %v1462_v25, 16 }
 0x1b3   :  { %v1355_v59 = vsel %vm1232_vm4, %v1354_v26, %v2573_v31  ;;  %v1424_v9 = vsel %vm1418_vm3, %v1421_v34, %v1423_v37  ;;  %v1474_v3 = vadd.s32 %v1470_v39, %v1466_v4  ;;  %v282_v60 = vperm.slane %v2455_v1, 6 }
 0x1b4   :  { %v1353_v45 = vsel %vm1232_vm4, %v1352_v43, %v1351_v2  ;;  %v1454_v18 = vadd.s32 %v1453_v51, %v1443_v15  ;;  %v1476_v23 = vadd.s32 %v1475_v63, %v1465_v22  ;;  %v1357_v54 = vsel %vm2654_vm5, 0, %v1355_v59 }
 0x1b5   :  { %v1356_v44 = vsel %vm2654_vm5, %v2337_v29, %v1353_v45  ;;  %v1478_v30 = vmul.u32 %v2614_v50, %v1424_v9  ;;  %v1374_v24 = vadd.s32 3, %v1357_v54  ;;  %vm298_vm10 = vcmp.gt.f32.partialorder %v282_v60, 0.5 }
 0x1b6   :  { %v1358_v49 = vmul.f32 %v1356_v44, %v1356_v44  ;;  %v1455_v7 = vadd.s32 %v1454_v18, %v1445_v5  ;;  %v1477_v47 = vadd.s32 %v1476_v23, %v1467_v57  ;;  %vm1373_vm0 = vweird.f32 %v2337_v29 }
 0x1b7   :  { %v1375_v48 = vand.u32 3, %v1374_v24  ;;  %vm1387_vm2 = vcmp.lt.s32.totalorder %v2541_v41, 0  ;;  %vm1386_vm3 = vcmp.le.f32.partialorder %v1385_v14, 0.7853982  ;;  %vm1528_vm8 = vweird.f32 %v2541_v41 }
 0x1b8   :  { %v1359_v19 = vmul.f32 -0.001358992, %v1358_v49  ;;  %v1366_v10 = vmul.f32 -0.00019511016, %v1358_v49  ;;  %vm1480_vm12 = vc.u32 %v1455_v7, %v1474_v3  ;;  %v1481_v21 = vadd.s32 1, %v1477_v47 }
 0x1b9   :  { %vm1376_vm11 = vcmp.lt.s32.totalorder %v1375_v48, 2  ;;  %vm1377_vm13 = vcmp.eq.s32.totalorder %v1375_v48, 0  ;;  %vm1380_vm14 = vcmp.eq.s32.totalorder %v1375_v48, 2  ;;  %v1479_v62 = vadd.s32 %v1474_v3, %v1455_v7 }
 0x1ba   :  { %v1360_v42 = vadd.f32 0.041655596, %v1359_v19  ;;  %v1367_v35 = vadd.f32 0.008332121, %v1366_v10  ;;  %v1482_v31 = vsel %vm1480_vm12, %v1481_v21, %v1477_v47 }
 0x1bb   :  { %v1483_v52 = vadd.s32 %v1482_v31, %v1478_v30  ;;  %v283_v30 = vperm.slane %v2455_v1, 7 }
 0x1bc   :  { %v1361_v33 = vmul.f32 %v1360_v42, %v1358_v49  ;;  %v1368_v38 = vmul.f32 %v1367_v35, %v1358_v49 }
 0x1bd   :  { %v1484_v58 = vadd.s32 536870912, %v1483_v52  ;;  %vm299_vm6 = vcmp.gt.f32.partialorder %v283_v30, 0.5 }
 0x1be   :  { %v1362_v56 = vadd.f32 -0.4999988, %v1361_v33  ;;  %v1369_v32 = vadd.f32 -0.16666654, %v1368_v38 }
 0x1bf   :  { %v1485_v20 = vshrl.u32 %v1484_v58, 30 }
 0x1c0   :  { %v1363_v25 = vmul.f32 %v1362_v56, %v1358_v49  ;;  %v1370_v26 = vmul.f32 %v1369_v32, %v1358_v49 }
 0x1c1   :  { %v1486_v13 = vshll.u32 %v1485_v20, 30  ;;  %v1509_v37 = vsub.s32 4, %v1485_v20 }
 0x1c2   :  { %v1364_v36 = vadd.f32 1.0, %v1363_v25  ;;  %v1371_v12 = vadd.f32 1.0, %v1370_v26 }
 0x1c3   :  { %v1487_v53 = vsub.s32 %v1483_v52, %v1486_v13  ;;  %v1510_v59 = vsel %vm1387_vm2, %v1509_v37, %v1485_v20 }
 0x1c4   :  { %v1372_v61 = vmul.f32 %v1371_v12, %v1356_v44  ;;  %v1381_v40 = vxor.u32 2147483648, %v1364_v36  ;;  %v1512_v9 = vsel %vm1386_vm3, 0, %v1510_v59 }
 0x1c5   :  { %vm1488_vm15 = vcmp.lt.s32.totalorder %v1487_v53, 0  ;;  %v1489_v11 = vsub.s32 0, %v1487_v53  ;;  %v1529_v35 = vadd.s32 3, %v1512_v9 }
 0x1c6   :  { %v1378_v55 = vxor.u32 2147483648, %v1372_v61  ;;  %v1382_v2 = vsel %vm1380_vm14, %v1381_v40, %v1372_v61 }
 0x1c7   :  { %v1490_v6 = vsel %vm1488_vm15, %v1489_v11, %v1487_v53  ;;  %v1530_v38 = vand.u32 3, %v1529_v35 }
 0x1c8   :  { %v1379_v50 = vsel %vm1377_vm13, %v1364_v36, %v1378_v55  ;;  %v1491_v43 = vclz %v1490_v6 }
 0x1c9   :  { %v1383_v28 = vsel %vm1376_vm11, %v1379_v50, %v1382_v2  ;;  %vm1532_vm4 = vcmp.eq.s32.totalorder %v1530_v38, 0  ;;  %vm1535_vm5 = vcmp.eq.s32.totalorder %v1530_v38, 2  ;;  %vm1531_vm7 = vcmp.lt.s32.totalorder %v1530_v38, 2 }
 0x1ca   :  { %v1384_v4 = vsel %vm1373_vm0, nan, %v1383_v28  ;;  %v1604_v17 = vadd.s32 4294967294, %v1491_v43 }
 0x1cb   :  { %v1546_v39 = vsel %vm298_vm10, %v2337_v29, %v1384_v4 }
 0x1cc   :  { %1554 = vst [vmem:[#allocation8 + $0x30] sm:$0xff] %v1546_v39  ;;  %vm1605_vm1 = vcmp.lt.s32.totalorder %v1604_v17, 0 }
 0x1cd   :  { %v1494_v0 = vsel %vm1605_vm1, 0, %v1604_v17 }
 0x1ce   :  { %v1495_v27 = vsub.s32 32, %v1494_v0  ;;  %v1499_v8 = vsub.s32 4294967266, %v1494_v0  ;;  %v1496_v45 = vshll.u32 %v1487_v53, %v1494_v0 }
 0x1d0   :  { %v1497_v15 = vshrl.u32 %v1479_v62, %v1495_v27  ;;  %v1500_v46 = vadd.s32 127, %v1499_v8 }
 0x1d2   :  { %v1498_v16 = vor.u32 %v1497_v15, %v1496_v45  ;;  %v1501_v44 = vshll.u32 %v1500_v46, 23 }
 0x1d4   :  { %v1502_v51 = vor.u32 4788187, %v1501_v44  ;;  %v1505_v63 = vcvt.s32.f32 %v1498_v16 }
 0x1d6   :  { %v1503_v22 = vand.u32 2147483647, %v1502_v51 }
 0x1d8   :  { %v1506_v49 = vmul.f32 %v1505_v63, %v1503_v22 }
 0x1da   :  { %v1507_v34 = vxor.u32 2147483648, %v1506_v49 }
 0x1dc   :  { %v1508_v29 = vsel %vm1387_vm2, %v1507_v34, %v1506_v49 }
 0x1dd   :  { %v1511_v5 = vsel %vm1386_vm3, %v2541_v41, %v1508_v29 }
 0x1de   :  { %v1513_v18 = vmul.f32 %v1511_v5, %v1511_v5 }
 0x1e0   :  { %v1514_v57 = vmul.f32 -0.001358992, %v1513_v18  ;;  %v1521_v23 = vmul.f32 -0.00019511016, %v1513_v18 }
 0x1e2   :  { %v1515_v19 = vadd.f32 0.041655596, %v1514_v57  ;;  %v1522_v10 = vadd.f32 0.008332121, %v1521_v23 }
 0x1e4   :  { %v1516_v7 = vmul.f32 %v1515_v19, %v1513_v18  ;;  %v1523_v3 = vmul.f32 %v1522_v10, %v1513_v18 }
 0x1e6   :  { %v1517_v47 = vadd.f32 -0.4999988, %v1516_v7  ;;  %v1524_v42 = vadd.f32 -0.16666654, %v1523_v3 }
 0x1e8   :  { %v1518_v21 = vmul.f32 %v1517_v47, %v1513_v18  ;;  %v1525_v54 = vmul.f32 %v1524_v42, %v1513_v18 }
 0x1ea   :  { %v1519_v33 = vadd.f32 1.0, %v1518_v21  ;;  %v1526_v14 = vadd.f32 1.0, %v1525_v54 }
 0x1ec   :  { %v1527_v31 = vmul.f32 %v1526_v14, %v1511_v5  ;;  %v1536_v56 = vxor.u32 2147483648, %v1519_v33 }
 0x1ee   :  { %v1533_v32 = vxor.u32 2147483648, %v1527_v31  ;;  %v1537_v24 = vsel %vm1535_vm5, %v1536_v56, %v1527_v31 }
 0x1f0   :  { %v1534_v52 = vsel %vm1532_vm4, %v1519_v33, %v1533_v32 }
 0x1f1   :  { %v1538_v25 = vsel %vm1531_vm7, %v1534_v52, %v1537_v24 }
 0x1f2   :  { %v1539_v26 = vsel %vm1528_vm8, nan, %v1538_v25 }
 0x1f3   :  { %v1547_v1 = vsel %vm299_vm6, %v2541_v41, %v1539_v26 }
 0x1f4   :  { %1555 = vst [vmem:[#allocation8 + $0x38] sm:$0xff] %v1547_v1 }
 0x1f5   :  { %1566 = dma.vmem_to_hbm [thread:$0]  %s1562_s2, 1024, %s1564_s30, [#allocation4]  }
 0x1f6   :  { %1721 = dma.done.wait [#allocation4], 1024  }
 0x1f7   :  { %1722 = vsyncadd [#allocation4], 4294966272 }
 0x1f8   :  { %1571 = vsyncpa [#allocation3], 1 }
 0x1f9   :  { %1572 = vsyncpa [#allocation6], 1 }
 0x1fa   :  { %1573 = vsyncpa [#allocation4], 1 }

</bundles_post_ra>
